<compile_context>
chip_gen: v7x
topology: tpu7x:2x2x1
jax: 0.10.0
libtpu: 0.0.40
codegen_flags: <defaults>
</compile_context>

<pallas_src>
import functools

import jax
import jax.numpy as jnp
from jax.experimental import pallas as pl
from jax.experimental.pallas import tpu as pltpu

LEAKY_SLOPE = 0.01   # nn.LeakyReLU default
LN_EPS = 1e-5        # nn.LayerNorm default
LANE = 128           # lane-dense padding for all activations / weights
N_LAYERS = 12        # 3 nets x 4 linear layers
N_W_SLOTS = 14       # 12 layers + 2 extra slots for the split concat-inputs


# ----------------------------------------------------------------------------
# Fused kernel: feature extractor (batch of 2) + forward model + inverse model.
# ----------------------------------------------------------------------------
def _icm_kernel(x_ref, pol_ref, w_ref, vec_ref, o_ref, *,
                feat_dim, fwd_dim, inv_dim):
    lane_idx = jax.lax.broadcasted_iota(jnp.int32, (1, LANE), 1)

    def linear(h, li):
        return (jnp.dot(h, w_ref[li], preferred_element_type=jnp.float32)
                + vec_ref[li:li + 1, :])

    def ln_lrelu(h, li, dout):
        # Masked LayerNorm over the first `dout` lanes (the rest are padding),
        # followed by LeakyReLU.  Padding lanes come out exactly 0.
        g = vec_ref[N_LAYERS + li:N_LAYERS + li + 1, :]
        be = vec_ref[2 * N_LAYERS + li:2 * N_LAYERS + li + 1, :]
        mask = lane_idx < dout
        inv_d = jnp.float32(1.0 / dout)
        hm = jnp.where(mask, h, 0.0)
        mu = jnp.sum(hm, axis=-1, keepdims=True) * inv_d
        d = jnp.where(mask, h - mu, 0.0)
        var = jnp.sum(d * d, axis=-1, keepdims=True) * inv_d
        hn = d * jax.lax.rsqrt(var + LN_EPS) * g + be
        return jnp.where(hn >= 0, hn, LEAKY_SLOPE * hn)

    # ---- feature extractor on both observations at once (rows 0, 1) ----
    h = x_ref[...]                                   # (2, LANE)
    h = ln_lrelu(linear(h, 0), 0, feat_dim)
    h = ln_lrelu(linear(h, 1), 1, feat_dim)
    h = ln_lrelu(linear(h, 2), 2, feat_dim)
    feats = jnp.tanh(linear(h, 3))                   # zeros beyond feat_dim
    o_ref[0:2, :] = feats

    f = feats[0:1, :]                                # feature_state
    f_ = feats[1:2, :]                               # feature_state_

    # ---- forward model: cat(f, policy) @ W1 == f @ W1_top + policy @ W1_bot ----
    pol = pol_ref[...]                               # policy in lanes [0, A)
    h = (jnp.dot(f, w_ref[4], preferred_element_type=jnp.float32)
         + jnp.dot(pol, w_ref[12], preferred_element_type=jnp.float32)
         + vec_ref[4:5, :])
    h = ln_lrelu(h, 4, fwd_dim)
    h = ln_lrelu(linear(h, 5), 5, fwd_dim)
    h = ln_lrelu(linear(h, 6), 6, fwd_dim)
    h = linear(h, 7)
    o_ref[2:3, :] = h

    # ---- inverse model: cat(f, f_) @ W1 == f @ W1_top + f_ @ W1_bot ----
    h = (jnp.dot(f, w_ref[8], preferred_element_type=jnp.float32)
         + jnp.dot(f_, w_ref[13], preferred_element_type=jnp.float32)
         + vec_ref[8:9, :])
    h = ln_lrelu(h, 8, inv_dim)
    h = ln_lrelu(linear(h, 9), 9, inv_dim)
    h = ln_lrelu(linear(h, 10), 10, inv_dim)
    h = linear(h, 11)
    o_ref[3:4, :] = h


# ----------------------------------------------------------------------------
# Deterministic parameter construction + packing into lane-dense slabs.
# ----------------------------------------------------------------------------
def _linear_init(key, d_in, d_out):
    kw, kb = jax.random.split(key)
    bound = 1.0 / jnp.sqrt(jnp.float32(d_in))
    w = jax.random.uniform(kw, (d_in, d_out), jnp.float32, -bound, bound)
    b = jax.random.uniform(kb, (d_out,), jnp.float32, -bound, bound)
    return w, b


def init_icm_params(key, input_dim, feat_dim, fwd_dim, inv_dim, action_space):
    """Returns (w_slab, vec_slab, raw).  `raw` keeps natural-shape params
    for the pure-JAX reference check."""
    k_feat, k_fwd, k_inv = jax.random.split(key, 3)

    def make_net(k, d_in, d_hid):
        keys = jax.random.split(k, 4)
        dims = [(d_in, d_hid)] + [(d_hid, d_hid)] * 3
        return [_linear_init(kk, di, do) for kk, (di, do) in zip(keys, dims)]

    feat_layers = make_net(k_feat, input_dim, feat_dim)
    fwd_layers = make_net(k_fwd, feat_dim + action_space, fwd_dim)
    inv_layers = make_net(k_inv, 2 * feat_dim, inv_dim)

    w_slab = jnp.zeros((N_W_SLOTS, LANE, LANE), jnp.float32)
    vec_slab = jnp.zeros((3 * N_LAYERS, LANE), jnp.float32)

    def put_w(slab, slot, w):
        return slab.at[slot, :w.shape[0], :w.shape[1]].set(w)

    def put_vec(slab, row, v):
        return slab.at[row, :v.shape[0]].set(v)

    # feature extractor -> weight slots 0..3
    for i, (w, b) in enumerate(feat_layers):
        w_slab = put_w(w_slab, i, w)
        vec_slab = put_vec(vec_slab, i, b)

    # forward model -> slots 4..7 (slot 12 holds the policy half of layer 0)
    w0, b0 = fwd_layers[0]
    w_slab = put_w(w_slab, 4, w0[:feat_dim])
    w_slab = put_w(w_slab, 12, w0[feat_dim:])
    vec_slab = put_vec(vec_slab, 4, b0)
    for i, (w, b) in enumerate(fwd_layers[1:], start=5):
        w_slab = put_w(w_slab, i, w)
        vec_slab = put_vec(vec_slab, i, b)

    # inverse model -> slots 8..11 (slot 13 holds the second-feature half)
    w0, b0 = inv_layers[0]
    w_slab = put_w(w_slab, 8, w0[:feat_dim])
    w_slab = put_w(w_slab, 13, w0[feat_dim:])
    vec_slab = put_vec(vec_slab, 8, b0)
    for i, (w, b) in enumerate(inv_layers[1:], start=9):
        w_slab = put_w(w_slab, i, w)
        vec_slab = put_vec(vec_slab, i, b)

    # LayerNorm gamma=1 / beta=0 after the first three Linears of each net.
    ln_dims = {0: feat_dim, 1: feat_dim, 2: feat_dim,
               4: fwd_dim, 5: fwd_dim, 6: fwd_dim,
               8: inv_dim, 9: inv_dim, 10: inv_dim}
    for li, do in ln_dims.items():
        vec_slab = put_vec(vec_slab, N_LAYERS + li,
                           jnp.ones((do,), jnp.float32))   # gamma
        # betas (rows 24..35) stay zero

    raw = dict(feat=feat_layers, fwd=fwd_layers, inv=inv_layers)
    return w_slab, vec_slab, raw


# ----------------------------------------------------------------------------
# Wrapper: pad inputs, single fused pallas_call, slice the (4, 128) output.
# ----------------------------------------------------------------------------
@functools.partial(jax.jit, static_argnames=(
    "input_dim", "feat_dim", "fwd_dim", "inv_dim", "action_space"))
def icm_forward(observation, observation_, policy, w_slab, vec_slab, *,
                input_dim, feat_dim, fwd_dim, inv_dim, action_space):
    x_pad = jnp.zeros((2, LANE), jnp.float32)
    x_pad = x_pad.at[0, :input_dim].set(observation)
    x_pad = x_pad.at[1, :input_dim].set(observation_)
    pol_pad = jnp.zeros((1, LANE), jnp.float32).at[0, :action_space].set(policy)

    kernel = functools.partial(_icm_kernel, feat_dim=feat_dim,
                               fwd_dim=fwd_dim, inv_dim=inv_dim)
    vmem = pl.BlockSpec(memory_space=pltpu.MemorySpace.VMEM)
    out = pl.pallas_call(
        kernel,
        out_shape=jax.ShapeDtypeStruct((4, LANE), jnp.float32),
        in_specs=[vmem, vmem, vmem, vmem],
        out_specs=vmem,
    )(x_pad, pol_pad, w_slab, vec_slab)

    feature_state = out[0, :feat_dim]
    feature_state_ = out[1, :feat_dim]
    next_feature_state_pred = out[2, :fwd_dim]
    action_pred = out[3, :inv_dim]
    return next_feature_state_pred, feature_state, feature_state_, action_pred


# ----------------------------------------------------------------------------
# Pure-JAX reference (mirrors the PyTorch forward) for correctness checking.
# ----------------------------------------------------------------------------
def _mlp_ref(x, layers):
    for i, (w, b) in enumerate(layers):
        x = jnp.dot(x, w, precision=jax.lax.Precision.HIGHEST) + b
        if i < 3:
            mu = jnp.mean(x)
            var = jnp.mean((x - mu) ** 2)
            x = (x - mu) * jax.lax.rsqrt(var + LN_EPS)   # gamma=1, beta=0
            x = jnp.where(x >= 0, x, LEAKY_SLOPE * x)
    return x


def icm_reference(obs, obs_, policy, raw):
    f = jnp.tanh(_mlp_ref(obs, raw["feat"]))
    f_ = jnp.tanh(_mlp_ref(obs_, raw["feat"]))
    nxt = _mlp_ref(jnp.concatenate([f, policy]), raw["fwd"])
    act = _mlp_ref(jnp.concatenate([f, f_]), raw["inv"])
    return nxt, f, f_, act


if __name__ == "__main__":
    INPUT_DIM = 16            # input_dims = (16,)
    FEATURE_DIM = 32          # feature_extractor_dim
    FORWARD_DIM = 32          # foward_model_dim
    INVERSE_DIM = 32          # inverse_model_dim
    ACTION_SPACE = 4          # action_space

    root = jax.random.PRNGKey(0)
    k_par, k_obs, k_obs_, k_pol = jax.random.split(root, 4)

    w_slab, vec_slab, raw = init_icm_params(
        k_par, INPUT_DIM, FEATURE_DIM, FORWARD_DIM, INVERSE_DIM, ACTION_SPACE)

    observation = jax.random.normal(k_obs, (INPUT_DIM,), jnp.float32)
    observation_ = jax.random.normal(k_obs_, (INPUT_DIM,), jnp.float32)
    policy = jax.nn.softmax(jax.random.normal(k_pol, (ACTION_SPACE,), jnp.float32))

    outs = icm_forward(observation, observation_, policy, w_slab, vec_slab,
                       input_dim=INPUT_DIM, feat_dim=FEATURE_DIM,
                       fwd_dim=FORWARD_DIM, inv_dim=INVERSE_DIM,
                       action_space=ACTION_SPACE)
    outs = jax.block_until_ready(outs)
    next_pred, feat_s, feat_s_, act_pred = outs

    assert next_pred.shape == (FORWARD_DIM,)
    assert feat_s.shape == (FEATURE_DIM,)
    assert feat_s_.shape == (FEATURE_DIM,)
    assert act_pred.shape == (INVERSE_DIM,)
    assert all(bool(jnp.all(jnp.isfinite(o))) for o in outs)

    ref = icm_reference(observation, observation_, policy, raw)
    for got, want in zip(outs, ref):
        assert jnp.allclose(got, want, atol=1e-4, rtol=1e-4), (
            float(jnp.max(jnp.abs(got - want))))

    print("KERNEL_OK")
</pallas_src>

<mosaic_0001>
module attributes {stable_mosaic.version = 11 : i64} {
  func.func @_icm_kernel(%arg0: memref<2x128xf32, #tpu.memory_space<vmem>>, %arg1: memref<1x128xf32, #tpu.memory_space<vmem>>, %arg2: memref<14x128x128xf32, #tpu.memory_space<vmem>>, %arg3: memref<36x128xf32, #tpu.memory_space<vmem>>, %arg4: memref<4x128xf32, #tpu.memory_space<vmem>>) attributes {dimension_semantics = [], scalar_prefetch = 0 : i64, scratch_operands = 0 : i64, tpu.core_type = #tpu.core_type<tc>} {
    %0 = tpu.iota {dimensions = array<i32: 1>} : vector<1x128xi32>
    %c0 = arith.constant 0 : index
    %c0_0 = arith.constant 0 : index
    %1 = vector.load %arg0[%c0, %c0_0] : memref<2x128xf32, #tpu.memory_space<vmem>>, vector<2x128xf32>
    %c0_1 = arith.constant 0 : index
    %c0_2 = arith.constant 0 : index
    %c0_3 = arith.constant 0 : index
    %2 = vector.load %arg2[%c0_1, %c0_2, %c0_3] : memref<14x128x128xf32, #tpu.memory_space<vmem>>, vector<1x128x128xf32>
    %3 = vector.shape_cast %2 : vector<1x128x128xf32> to vector<128x128xf32>
    %cst = arith.constant dense<0.000000e+00> : vector<2x128xf32>
    %4 = tpu.matmul %1, %3, %cst {dimension_numbers = #tpu.dot_dimension_numbers<[1], [0], [0], [1], [0, 0, 1, 1], [], []>} : vector<2x128xf32>, vector<128x128xf32>, vector<2x128xf32> -> vector<2x128xf32>
    %c0_4 = arith.constant 0 : index
    %c0_5 = arith.constant 0 : index
    %5 = vector.load %arg3[%c0_4, %c0_5] : memref<36x128xf32, #tpu.memory_space<vmem>>, vector<1x128xf32>
    %6 = vector.broadcast %5 : vector<1x128xf32> to vector<2x128xf32>
    %7 = arith.addf %4, %6 : vector<2x128xf32>
    %c12 = arith.constant 12 : index
    %c0_6 = arith.constant 0 : index
    %8 = vector.load %arg3[%c12, %c0_6] : memref<36x128xf32, #tpu.memory_space<vmem>>, vector<1x128xf32>
    %c24 = arith.constant 24 : index
    %c0_7 = arith.constant 0 : index
    %9 = vector.load %arg3[%c24, %c0_7] : memref<36x128xf32, #tpu.memory_space<vmem>>, vector<1x128xf32>
    %c32_i32 = arith.constant 32 : i32
    %10 = vector.broadcast %c32_i32 : i32 to vector<1x128xi32>
    %11 = arith.cmpi slt, %0, %10 : vector<1x128xi32>
    %cst_8 = arith.constant 0.000000e+00 : f32
    %12 = vector.shape_cast %11 : vector<1x128xi1> to vector<1x128xi1>
    %13 = vector.broadcast %12 : vector<1x128xi1> to vector<2x128xi1>
    %14 = vector.broadcast %cst_8 : f32 to vector<2x128xf32>
    %15 = arith.select %13, %7, %14 : vector<2x128xi1>, vector<2x128xf32>
    %cst_9 = arith.constant dense<0.000000e+00> : vector<2xf32>
    %16 = vector.multi_reduction <add>, %15, %cst_9 [1] : vector<2x128xf32> to vector<2xf32>
    %17 = vector.shape_cast %16 : vector<2xf32> to vector<2x1xf32>
    %cst_10 = arith.constant 3.125000e-02 : f32
    %18 = vector.broadcast %cst_10 : f32 to vector<2x1xf32>
    %19 = arith.mulf %17, %18 : vector<2x1xf32>
    %20 = vector.broadcast %19 : vector<2x1xf32> to vector<2x128xf32>
    %21 = arith.subf %7, %20 : vector<2x128xf32>
    %cst_11 = arith.constant 0.000000e+00 : f32
    %22 = vector.shape_cast %11 : vector<1x128xi1> to vector<1x128xi1>
    %23 = vector.broadcast %22 : vector<1x128xi1> to vector<2x128xi1>
    %24 = vector.broadcast %cst_11 : f32 to vector<2x128xf32>
    %25 = arith.select %23, %21, %24 : vector<2x128xi1>, vector<2x128xf32>
    %26 = arith.mulf %25, %25 : vector<2x128xf32>
    %cst_12 = arith.constant dense<0.000000e+00> : vector<2xf32>
    %27 = vector.multi_reduction <add>, %26, %cst_12 [1] : vector<2x128xf32> to vector<2xf32>
    %28 = vector.shape_cast %27 : vector<2xf32> to vector<2x1xf32>
    %cst_13 = arith.constant 3.125000e-02 : f32
    %29 = vector.broadcast %cst_13 : f32 to vector<2x1xf32>
    %30 = arith.mulf %28, %29 : vector<2x1xf32>
    %cst_14 = arith.constant 9.99999974E-6 : f32
    %31 = vector.broadcast %cst_14 : f32 to vector<2x1xf32>
    %32 = arith.addf %30, %31 : vector<2x1xf32>
    %33 = math.rsqrt %32 : vector<2x1xf32>
    %34 = vector.broadcast %33 : vector<2x1xf32> to vector<2x128xf32>
    %35 = arith.mulf %25, %34 : vector<2x128xf32>
    %36 = vector.broadcast %8 : vector<1x128xf32> to vector<2x128xf32>
    %37 = arith.mulf %35, %36 : vector<2x128xf32>
    %38 = vector.broadcast %9 : vector<1x128xf32> to vector<2x128xf32>
    %39 = arith.addf %37, %38 : vector<2x128xf32>
    %cst_15 = arith.constant 0.000000e+00 : f32
    %40 = vector.broadcast %cst_15 : f32 to vector<2x128xf32>
    %41 = arith.cmpf oge, %39, %40 : vector<2x128xf32>
    %cst_16 = arith.constant 0.00999999977 : f32
    %42 = vector.broadcast %cst_16 : f32 to vector<2x128xf32>
    %43 = arith.mulf %42, %39 : vector<2x128xf32>
    %44 = arith.select %41, %39, %43 : vector<2x128xi1>, vector<2x128xf32>
    %c1 = arith.constant 1 : index
    %c0_17 = arith.constant 0 : index
    %c0_18 = arith.constant 0 : index
    %45 = vector.load %arg2[%c1, %c0_17, %c0_18] : memref<14x128x128xf32, #tpu.memory_space<vmem>>, vector<1x128x128xf32>
    %46 = vector.shape_cast %45 : vector<1x128x128xf32> to vector<128x128xf32>
    %cst_19 = arith.constant dense<0.000000e+00> : vector<2x128xf32>
    %47 = tpu.matmul %44, %46, %cst_19 {dimension_numbers = #tpu.dot_dimension_numbers<[1], [0], [0], [1], [0, 0, 1, 1], [], []>} : vector<2x128xf32>, vector<128x128xf32>, vector<2x128xf32> -> vector<2x128xf32>
    %c1_20 = arith.constant 1 : index
    %c0_21 = arith.constant 0 : index
    %48 = vector.load %arg3[%c1_20, %c0_21] : memref<36x128xf32, #tpu.memory_space<vmem>>, vector<1x128xf32>
    %49 = vector.broadcast %48 : vector<1x128xf32> to vector<2x128xf32>
    %50 = arith.addf %47, %49 : vector<2x128xf32>
    %c13 = arith.constant 13 : index
    %c0_22 = arith.constant 0 : index
    %51 = vector.load %arg3[%c13, %c0_22] : memref<36x128xf32, #tpu.memory_space<vmem>>, vector<1x128xf32>
    %c25 = arith.constant 25 : index
    %c0_23 = arith.constant 0 : index
    %52 = vector.load %arg3[%c25, %c0_23] : memref<36x128xf32, #tpu.memory_space<vmem>>, vector<1x128xf32>
    %c32_i32_24 = arith.constant 32 : i32
    %53 = vector.broadcast %c32_i32_24 : i32 to vector<1x128xi32>
    %54 = arith.cmpi slt, %0, %53 : vector<1x128xi32>
    %cst_25 = arith.constant 0.000000e+00 : f32
    %55 = vector.shape_cast %54 : vector<1x128xi1> to vector<1x128xi1>
    %56 = vector.broadcast %55 : vector<1x128xi1> to vector<2x128xi1>
    %57 = vector.broadcast %cst_25 : f32 to vector<2x128xf32>
    %58 = arith.select %56, %50, %57 : vector<2x128xi1>, vector<2x128xf32>
    %cst_26 = arith.constant dense<0.000000e+00> : vector<2xf32>
    %59 = vector.multi_reduction <add>, %58, %cst_26 [1] : vector<2x128xf32> to vector<2xf32>
    %60 = vector.shape_cast %59 : vector<2xf32> to vector<2x1xf32>
    %cst_27 = arith.constant 3.125000e-02 : f32
    %61 = vector.broadcast %cst_27 : f32 to vector<2x1xf32>
    %62 = arith.mulf %60, %61 : vector<2x1xf32>
    %63 = vector.broadcast %62 : vector<2x1xf32> to vector<2x128xf32>
    %64 = arith.subf %50, %63 : vector<2x128xf32>
    %cst_28 = arith.constant 0.000000e+00 : f32
    %65 = vector.shape_cast %54 : vector<1x128xi1> to vector<1x128xi1>
    %66 = vector.broadcast %65 : vector<1x128xi1> to vector<2x128xi1>
    %67 = vector.broadcast %cst_28 : f32 to vector<2x128xf32>
    %68 = arith.select %66, %64, %67 : vector<2x128xi1>, vector<2x128xf32>
    %69 = arith.mulf %68, %68 : vector<2x128xf32>
    %cst_29 = arith.constant dense<0.000000e+00> : vector<2xf32>
    %70 = vector.multi_reduction <add>, %69, %cst_29 [1] : vector<2x128xf32> to vector<2xf32>
    %71 = vector.shape_cast %70 : vector<2xf32> to vector<2x1xf32>
    %cst_30 = arith.constant 3.125000e-02 : f32
    %72 = vector.broadcast %cst_30 : f32 to vector<2x1xf32>
    %73 = arith.mulf %71, %72 : vector<2x1xf32>
    %cst_31 = arith.constant 9.99999974E-6 : f32
    %74 = vector.broadcast %cst_31 : f32 to vector<2x1xf32>
    %75 = arith.addf %73, %74 : vector<2x1xf32>
    %76 = math.rsqrt %75 : vector<2x1xf32>
    %77 = vector.broadcast %76 : vector<2x1xf32> to vector<2x128xf32>
    %78 = arith.mulf %68, %77 : vector<2x128xf32>
    %79 = vector.broadcast %51 : vector<1x128xf32> to vector<2x128xf32>
    %80 = arith.mulf %78, %79 : vector<2x128xf32>
    %81 = vector.broadcast %52 : vector<1x128xf32> to vector<2x128xf32>
    %82 = arith.addf %80, %81 : vector<2x128xf32>
    %cst_32 = arith.constant 0.000000e+00 : f32
    %83 = vector.broadcast %cst_32 : f32 to vector<2x128xf32>
    %84 = arith.cmpf oge, %82, %83 : vector<2x128xf32>
    %cst_33 = arith.constant 0.00999999977 : f32
    %85 = vector.broadcast %cst_33 : f32 to vector<2x128xf32>
    %86 = arith.mulf %85, %82 : vector<2x128xf32>
    %87 = arith.select %84, %82, %86 : vector<2x128xi1>, vector<2x128xf32>
    %c2 = arith.constant 2 : index
    %c0_34 = arith.constant 0 : index
    %c0_35 = arith.constant 0 : index
    %88 = vector.load %arg2[%c2, %c0_34, %c0_35] : memref<14x128x128xf32, #tpu.memory_space<vmem>>, vector<1x128x128xf32>
    %89 = vector.shape_cast %88 : vector<1x128x128xf32> to vector<128x128xf32>
    %cst_36 = arith.constant dense<0.000000e+00> : vector<2x128xf32>
    %90 = tpu.matmul %87, %89, %cst_36 {dimension_numbers = #tpu.dot_dimension_numbers<[1], [0], [0], [1], [0, 0, 1, 1], [], []>} : vector<2x128xf32>, vector<128x128xf32>, vector<2x128xf32> -> vector<2x128xf32>
    %c2_37 = arith.constant 2 : index
    %c0_38 = arith.constant 0 : index
    %91 = vector.load %arg3[%c2_37, %c0_38] : memref<36x128xf32, #tpu.memory_space<vmem>>, vector<1x128xf32>
    %92 = vector.broadcast %91 : vector<1x128xf32> to vector<2x128xf32>
    %93 = arith.addf %90, %92 : vector<2x128xf32>
    %c14 = arith.constant 14 : index
    %c0_39 = arith.constant 0 : index
    %94 = vector.load %arg3[%c14, %c0_39] : memref<36x128xf32, #tpu.memory_space<vmem>>, vector<1x128xf32>
    %c26 = arith.constant 26 : index
    %c0_40 = arith.constant 0 : index
    %95 = vector.load %arg3[%c26, %c0_40] : memref<36x128xf32, #tpu.memory_space<vmem>>, vector<1x128xf32>
    %c32_i32_41 = arith.constant 32 : i32
    %96 = vector.broadcast %c32_i32_41 : i32 to vector<1x128xi32>
    %97 = arith.cmpi slt, %0, %96 : vector<1x128xi32>
    %cst_42 = arith.constant 0.000000e+00 : f32
    %98 = vector.shape_cast %97 : vector<1x128xi1> to vector<1x128xi1>
    %99 = vector.broadcast %98 : vector<1x128xi1> to vector<2x128xi1>
    %100 = vector.broadcast %cst_42 : f32 to vector<2x128xf32>
    %101 = arith.select %99, %93, %100 : vector<2x128xi1>, vector<2x128xf32>
    %cst_43 = arith.constant dense<0.000000e+00> : vector<2xf32>
    %102 = vector.multi_reduction <add>, %101, %cst_43 [1] : vector<2x128xf32> to vector<2xf32>
    %103 = vector.shape_cast %102 : vector<2xf32> to vector<2x1xf32>
    %cst_44 = arith.constant 3.125000e-02 : f32
    %104 = vector.broadcast %cst_44 : f32 to vector<2x1xf32>
    %105 = arith.mulf %103, %104 : vector<2x1xf32>
    %106 = vector.broadcast %105 : vector<2x1xf32> to vector<2x128xf32>
    %107 = arith.subf %93, %106 : vector<2x128xf32>
    %cst_45 = arith.constant 0.000000e+00 : f32
    %108 = vector.shape_cast %97 : vector<1x128xi1> to vector<1x128xi1>
    %109 = vector.broadcast %108 : vector<1x128xi1> to vector<2x128xi1>
    %110 = vector.broadcast %cst_45 : f32 to vector<2x128xf32>
    %111 = arith.select %109, %107, %110 : vector<2x128xi1>, vector<2x128xf32>
    %112 = arith.mulf %111, %111 : vector<2x128xf32>
    %cst_46 = arith.constant dense<0.000000e+00> : vector<2xf32>
    %113 = vector.multi_reduction <add>, %112, %cst_46 [1] : vector<2x128xf32> to vector<2xf32>
    %114 = vector.shape_cast %113 : vector<2xf32> to vector<2x1xf32>
    %cst_47 = arith.constant 3.125000e-02 : f32
    %115 = vector.broadcast %cst_47 : f32 to vector<2x1xf32>
    %116 = arith.mulf %114, %115 : vector<2x1xf32>
    %cst_48 = arith.constant 9.99999974E-6 : f32
    %117 = vector.broadcast %cst_48 : f32 to vector<2x1xf32>
    %118 = arith.addf %116, %117 : vector<2x1xf32>
    %119 = math.rsqrt %118 : vector<2x1xf32>
    %120 = vector.broadcast %119 : vector<2x1xf32> to vector<2x128xf32>
    %121 = arith.mulf %111, %120 : vector<2x128xf32>
    %122 = vector.broadcast %94 : vector<1x128xf32> to vector<2x128xf32>
    %123 = arith.mulf %121, %122 : vector<2x128xf32>
    %124 = vector.broadcast %95 : vector<1x128xf32> to vector<2x128xf32>
    %125 = arith.addf %123, %124 : vector<2x128xf32>
    %cst_49 = arith.constant 0.000000e+00 : f32
    %126 = vector.broadcast %cst_49 : f32 to vector<2x128xf32>
    %127 = arith.cmpf oge, %125, %126 : vector<2x128xf32>
    %cst_50 = arith.constant 0.00999999977 : f32
    %128 = vector.broadcast %cst_50 : f32 to vector<2x128xf32>
    %129 = arith.mulf %128, %125 : vector<2x128xf32>
    %130 = arith.select %127, %125, %129 : vector<2x128xi1>, vector<2x128xf32>
    %c3 = arith.constant 3 : index
    %c0_51 = arith.constant 0 : index
    %c0_52 = arith.constant 0 : index
    %131 = vector.load %arg2[%c3, %c0_51, %c0_52] : memref<14x128x128xf32, #tpu.memory_space<vmem>>, vector<1x128x128xf32>
    %132 = vector.shape_cast %131 : vector<1x128x128xf32> to vector<128x128xf32>
    %cst_53 = arith.constant dense<0.000000e+00> : vector<2x128xf32>
    %133 = tpu.matmul %130, %132, %cst_53 {dimension_numbers = #tpu.dot_dimension_numbers<[1], [0], [0], [1], [0, 0, 1, 1], [], []>} : vector<2x128xf32>, vector<128x128xf32>, vector<2x128xf32> -> vector<2x128xf32>
    %c3_54 = arith.constant 3 : index
    %c0_55 = arith.constant 0 : index
    %134 = vector.load %arg3[%c3_54, %c0_55] : memref<36x128xf32, #tpu.memory_space<vmem>>, vector<1x128xf32>
    %135 = vector.broadcast %134 : vector<1x128xf32> to vector<2x128xf32>
    %136 = arith.addf %133, %135 : vector<2x128xf32>
    %137 = math.tanh %136 : vector<2x128xf32>
    %c0_56 = arith.constant 0 : index
    %c0_57 = arith.constant 0 : index
    %138 = vector.load %arg4[%c0_56, %c0_57] : memref<4x128xf32, #tpu.memory_space<vmem>>, vector<2x128xf32>
    tpu.vector_store %arg4[%c0_56, %c0_57], %137 {strides = array<i32>} : memref<4x128xf32, #tpu.memory_space<vmem>>, vector<2x128xf32>,
    %139 = vector.extract_strided_slice %137 {offsets = [0, 0], sizes = [1, 128], strides = [1, 1]} : vector<2x128xf32> to vector<1x128xf32>
    %140 = vector.extract_strided_slice %137 {offsets = [1, 0], sizes = [1, 128], strides = [1, 1]} : vector<2x128xf32> to vector<1x128xf32>
    %c0_58 = arith.constant 0 : index
    %c0_59 = arith.constant 0 : index
    %141 = vector.load %arg1[%c0_58, %c0_59] : memref<1x128xf32, #tpu.memory_space<vmem>>, vector<1x128xf32>
    %c4 = arith.constant 4 : index
    %c0_60 = arith.constant 0 : index
    %c0_61 = arith.constant 0 : index
    %142 = vector.load %arg2[%c4, %c0_60, %c0_61] : memref<14x128x128xf32, #tpu.memory_space<vmem>>, vector<1x128x128xf32>
    %143 = vector.shape_cast %142 : vector<1x128x128xf32> to vector<128x128xf32>
    %cst_62 = arith.constant dense<0.000000e+00> : vector<1x128xf32>
    %144 = tpu.matmul %139, %143, %cst_62 {dimension_numbers = #tpu.dot_dimension_numbers<[1], [0], [0], [1], [0, 0, 1, 1], [], []>} : vector<1x128xf32>, vector<128x128xf32>, vector<1x128xf32> -> vector<1x128xf32>
    %c12_63 = arith.constant 12 : index
    %c0_64 = arith.constant 0 : index
    %c0_65 = arith.constant 0 : index
    %145 = vector.load %arg2[%c12_63, %c0_64, %c0_65] : memref<14x128x128xf32, #tpu.memory_space<vmem>>, vector<1x128x128xf32>
    %146 = vector.shape_cast %145 : vector<1x128x128xf32> to vector<128x128xf32>
    %cst_66 = arith.constant dense<0.000000e+00> : vector<1x128xf32>
    %147 = tpu.matmul %141, %146, %cst_66 {dimension_numbers = #tpu.dot_dimension_numbers<[1], [0], [0], [1], [0, 0, 1, 1], [], []>} : vector<1x128xf32>, vector<128x128xf32>, vector<1x128xf32> -> vector<1x128xf32>
    %148 = arith.addf %144, %147 : vector<1x128xf32>
    %c4_67 = arith.constant 4 : index
    %c0_68 = arith.constant 0 : index
    %149 = vector.load %arg3[%c4_67, %c0_68] : memref<36x128xf32, #tpu.memory_space<vmem>>, vector<1x128xf32>
    %150 = arith.addf %148, %149 : vector<1x128xf32>
    %c16 = arith.constant 16 : index
    %c0_69 = arith.constant 0 : index
    %151 = vector.load %arg3[%c16, %c0_69] : memref<36x128xf32, #tpu.memory_space<vmem>>, vector<1x128xf32>
    %c28 = arith.constant 28 : index
    %c0_70 = arith.constant 0 : index
    %152 = vector.load %arg3[%c28, %c0_70] : memref<36x128xf32, #tpu.memory_space<vmem>>, vector<1x128xf32>
    %c32_i32_71 = arith.constant 32 : i32
    %153 = vector.broadcast %c32_i32_71 : i32 to vector<1x128xi32>
    %154 = arith.cmpi slt, %0, %153 : vector<1x128xi32>
    %cst_72 = arith.constant 0.000000e+00 : f32
    %155 = vector.broadcast %cst_72 : f32 to vector<1x128xf32>
    %156 = arith.select %154, %150, %155 : vector<1x128xi1>, vector<1x128xf32>
    %cst_73 = arith.constant dense<0.000000e+00> : vector<1xf32>
    %157 = vector.multi_reduction <add>, %156, %cst_73 [1] : vector<1x128xf32> to vector<1xf32>
    %158 = vector.shape_cast %157 : vector<1xf32> to vector<1x1xf32>
    %cst_74 = arith.constant 3.125000e-02 : f32
    %159 = vector.broadcast %cst_74 : f32 to vector<1x1xf32>
    %160 = arith.mulf %158, %159 : vector<1x1xf32>
    %161 = vector.broadcast %160 : vector<1x1xf32> to vector<1x128xf32>
    %162 = arith.subf %150, %161 : vector<1x128xf32>
    %cst_75 = arith.constant 0.000000e+00 : f32
    %163 = vector.broadcast %cst_75 : f32 to vector<1x128xf32>
    %164 = arith.select %154, %162, %163 : vector<1x128xi1>, vector<1x128xf32>
    %165 = arith.mulf %164, %164 : vector<1x128xf32>
    %cst_76 = arith.constant dense<0.000000e+00> : vector<1xf32>
    %166 = vector.multi_reduction <add>, %165, %cst_76 [1] : vector<1x128xf32> to vector<1xf32>
    %167 = vector.shape_cast %166 : vector<1xf32> to vector<1x1xf32>
    %cst_77 = arith.constant 3.125000e-02 : f32
    %168 = vector.broadcast %cst_77 : f32 to vector<1x1xf32>
    %169 = arith.mulf %167, %168 : vector<1x1xf32>
    %cst_78 = arith.constant 9.99999974E-6 : f32
    %170 = vector.broadcast %cst_78 : f32 to vector<1x1xf32>
    %171 = arith.addf %169, %170 : vector<1x1xf32>
    %172 = math.rsqrt %171 : vector<1x1xf32>
    %173 = vector.broadcast %172 : vector<1x1xf32> to vector<1x128xf32>
    %174 = arith.mulf %164, %173 : vector<1x128xf32>
    %175 = arith.mulf %174, %151 : vector<1x128xf32>
    %176 = arith.addf %175, %152 : vector<1x128xf32>
    %cst_79 = arith.constant 0.000000e+00 : f32
    %177 = vector.broadcast %cst_79 : f32 to vector<1x128xf32>
    %178 = arith.cmpf oge, %176, %177 : vector<1x128xf32>
    %cst_80 = arith.constant 0.00999999977 : f32
    %179 = vector.broadcast %cst_80 : f32 to vector<1x128xf32>
    %180 = arith.mulf %179, %176 : vector<1x128xf32>
    %181 = arith.select %178, %176, %180 : vector<1x128xi1>, vector<1x128xf32>
    %c5 = arith.constant 5 : index
    %c0_81 = arith.constant 0 : index
    %c0_82 = arith.constant 0 : index
    %182 = vector.load %arg2[%c5, %c0_81, %c0_82] : memref<14x128x128xf32, #tpu.memory_space<vmem>>, vector<1x128x128xf32>
    %183 = vector.shape_cast %182 : vector<1x128x128xf32> to vector<128x128xf32>
    %cst_83 = arith.constant dense<0.000000e+00> : vector<1x128xf32>
    %184 = tpu.matmul %181, %183, %cst_83 {dimension_numbers = #tpu.dot_dimension_numbers<[1], [0], [0], [1], [0, 0, 1, 1], [], []>} : vector<1x128xf32>, vector<128x128xf32>, vector<1x128xf32> -> vector<1x128xf32>
    %c5_84 = arith.constant 5 : index
    %c0_85 = arith.constant 0 : index
    %185 = vector.load %arg3[%c5_84, %c0_85] : memref<36x128xf32, #tpu.memory_space<vmem>>, vector<1x128xf32>
    %186 = arith.addf %184, %185 : vector<1x128xf32>
    %c17 = arith.constant 17 : index
    %c0_86 = arith.constant 0 : index
    %187 = vector.load %arg3[%c17, %c0_86] : memref<36x128xf32, #tpu.memory_space<vmem>>, vector<1x128xf32>
    %c29 = arith.constant 29 : index
    %c0_87 = arith.constant 0 : index
    %188 = vector.load %arg3[%c29, %c0_87] : memref<36x128xf32, #tpu.memory_space<vmem>>, vector<1x128xf32>
    %c32_i32_88 = arith.constant 32 : i32
    %189 = vector.broadcast %c32_i32_88 : i32 to vector<1x128xi32>
    %190 = arith.cmpi slt, %0, %189 : vector<1x128xi32>
    %cst_89 = arith.constant 0.000000e+00 : f32
    %191 = vector.broadcast %cst_89 : f32 to vector<1x128xf32>
    %192 = arith.select %190, %186, %191 : vector<1x128xi1>, vector<1x128xf32>
    %cst_90 = arith.constant dense<0.000000e+00> : vector<1xf32>
    %193 = vector.multi_reduction <add>, %192, %cst_90 [1] : vector<1x128xf32> to vector<1xf32>
    %194 = vector.shape_cast %193 : vector<1xf32> to vector<1x1xf32>
    %cst_91 = arith.constant 3.125000e-02 : f32
    %195 = vector.broadcast %cst_91 : f32 to vector<1x1xf32>
    %196 = arith.mulf %194, %195 : vector<1x1xf32>
    %197 = vector.broadcast %196 : vector<1x1xf32> to vector<1x128xf32>
    %198 = arith.subf %186, %197 : vector<1x128xf32>
    %cst_92 = arith.constant 0.000000e+00 : f32
    %199 = vector.broadcast %cst_92 : f32 to vector<1x128xf32>
    %200 = arith.select %190, %198, %199 : vector<1x128xi1>, vector<1x128xf32>
    %201 = arith.mulf %200, %200 : vector<1x128xf32>
    %cst_93 = arith.constant dense<0.000000e+00> : vector<1xf32>
    %202 = vector.multi_reduction <add>, %201, %cst_93 [1] : vector<1x128xf32> to vector<1xf32>
    %203 = vector.shape_cast %202 : vector<1xf32> to vector<1x1xf32>
    %cst_94 = arith.constant 3.125000e-02 : f32
    %204 = vector.broadcast %cst_94 : f32 to vector<1x1xf32>
    %205 = arith.mulf %203, %204 : vector<1x1xf32>
    %cst_95 = arith.constant 9.99999974E-6 : f32
    %206 = vector.broadcast %cst_95 : f32 to vector<1x1xf32>
    %207 = arith.addf %205, %206 : vector<1x1xf32>
    %208 = math.rsqrt %207 : vector<1x1xf32>
    %209 = vector.broadcast %208 : vector<1x1xf32> to vector<1x128xf32>
    %210 = arith.mulf %200, %209 : vector<1x128xf32>
    %211 = arith.mulf %210, %187 : vector<1x128xf32>
    %212 = arith.addf %211, %188 : vector<1x128xf32>
    %cst_96 = arith.constant 0.000000e+00 : f32
    %213 = vector.broadcast %cst_96 : f32 to vector<1x128xf32>
    %214 = arith.cmpf oge, %212, %213 : vector<1x128xf32>
    %cst_97 = arith.constant 0.00999999977 : f32
    %215 = vector.broadcast %cst_97 : f32 to vector<1x128xf32>
    %216 = arith.mulf %215, %212 : vector<1x128xf32>
    %217 = arith.select %214, %212, %216 : vector<1x128xi1>, vector<1x128xf32>
    %c6 = arith.constant 6 : index
    %c0_98 = arith.constant 0 : index
    %c0_99 = arith.constant 0 : index
    %218 = vector.load %arg2[%c6, %c0_98, %c0_99] : memref<14x128x128xf32, #tpu.memory_space<vmem>>, vector<1x128x128xf32>
    %219 = vector.shape_cast %218 : vector<1x128x128xf32> to vector<128x128xf32>
    %cst_100 = arith.constant dense<0.000000e+00> : vector<1x128xf32>
    %220 = tpu.matmul %217, %219, %cst_100 {dimension_numbers = #tpu.dot_dimension_numbers<[1], [0], [0], [1], [0, 0, 1, 1], [], []>} : vector<1x128xf32>, vector<128x128xf32>, vector<1x128xf32> -> vector<1x128xf32>
    %c6_101 = arith.constant 6 : index
    %c0_102 = arith.constant 0 : index
    %221 = vector.load %arg3[%c6_101, %c0_102] : memref<36x128xf32, #tpu.memory_space<vmem>>, vector<1x128xf32>
    %222 = arith.addf %220, %221 : vector<1x128xf32>
    %c18 = arith.constant 18 : index
    %c0_103 = arith.constant 0 : index
    %223 = vector.load %arg3[%c18, %c0_103] : memref<36x128xf32, #tpu.memory_space<vmem>>, vector<1x128xf32>
    %c30 = arith.constant 30 : index
    %c0_104 = arith.constant 0 : index
    %224 = vector.load %arg3[%c30, %c0_104] : memref<36x128xf32, #tpu.memory_space<vmem>>, vector<1x128xf32>
    %c32_i32_105 = arith.constant 32 : i32
    %225 = vector.broadcast %c32_i32_105 : i32 to vector<1x128xi32>
    %226 = arith.cmpi slt, %0, %225 : vector<1x128xi32>
    %cst_106 = arith.constant 0.000000e+00 : f32
    %227 = vector.broadcast %cst_106 : f32 to vector<1x128xf32>
    %228 = arith.select %226, %222, %227 : vector<1x128xi1>, vector<1x128xf32>
    %cst_107 = arith.constant dense<0.000000e+00> : vector<1xf32>
    %229 = vector.multi_reduction <add>, %228, %cst_107 [1] : vector<1x128xf32> to vector<1xf32>
    %230 = vector.shape_cast %229 : vector<1xf32> to vector<1x1xf32>
    %cst_108 = arith.constant 3.125000e-02 : f32
    %231 = vector.broadcast %cst_108 : f32 to vector<1x1xf32>
    %232 = arith.mulf %230, %231 : vector<1x1xf32>
    %233 = vector.broadcast %232 : vector<1x1xf32> to vector<1x128xf32>
    %234 = arith.subf %222, %233 : vector<1x128xf32>
    %cst_109 = arith.constant 0.000000e+00 : f32
    %235 = vector.broadcast %cst_109 : f32 to vector<1x128xf32>
    %236 = arith.select %226, %234, %235 : vector<1x128xi1>, vector<1x128xf32>
    %237 = arith.mulf %236, %236 : vector<1x128xf32>
    %cst_110 = arith.constant dense<0.000000e+00> : vector<1xf32>
    %238 = vector.multi_reduction <add>, %237, %cst_110 [1] : vector<1x128xf32> to vector<1xf32>
    %239 = vector.shape_cast %238 : vector<1xf32> to vector<1x1xf32>
    %cst_111 = arith.constant 3.125000e-02 : f32
    %240 = vector.broadcast %cst_111 : f32 to vector<1x1xf32>
    %241 = arith.mulf %239, %240 : vector<1x1xf32>
    %cst_112 = arith.constant 9.99999974E-6 : f32
    %242 = vector.broadcast %cst_112 : f32 to vector<1x1xf32>
    %243 = arith.addf %241, %242 : vector<1x1xf32>
    %244 = math.rsqrt %243 : vector<1x1xf32>
    %245 = vector.broadcast %244 : vector<1x1xf32> to vector<1x128xf32>
    %246 = arith.mulf %236, %245 : vector<1x128xf32>
    %247 = arith.mulf %246, %223 : vector<1x128xf32>
    %248 = arith.addf %247, %224 : vector<1x128xf32>
    %cst_113 = arith.constant 0.000000e+00 : f32
    %249 = vector.broadcast %cst_113 : f32 to vector<1x128xf32>
    %250 = arith.cmpf oge, %248, %249 : vector<1x128xf32>
    %cst_114 = arith.constant 0.00999999977 : f32
    %251 = vector.broadcast %cst_114 : f32 to vector<1x128xf32>
    %252 = arith.mulf %251, %248 : vector<1x128xf32>
    %253 = arith.select %250, %248, %252 : vector<1x128xi1>, vector<1x128xf32>
    %c7 = arith.constant 7 : index
    %c0_115 = arith.constant 0 : index
    %c0_116 = arith.constant 0 : index
    %254 = vector.load %arg2[%c7, %c0_115, %c0_116] : memref<14x128x128xf32, #tpu.memory_space<vmem>>, vector<1x128x128xf32>
    %255 = vector.shape_cast %254 : vector<1x128x128xf32> to vector<128x128xf32>
    %cst_117 = arith.constant dense<0.000000e+00> : vector<1x128xf32>
    %256 = tpu.matmul %253, %255, %cst_117 {dimension_numbers = #tpu.dot_dimension_numbers<[1], [0], [0], [1], [0, 0, 1, 1], [], []>} : vector<1x128xf32>, vector<128x128xf32>, vector<1x128xf32> -> vector<1x128xf32>
    %c7_118 = arith.constant 7 : index
    %c0_119 = arith.constant 0 : index
    %257 = vector.load %arg3[%c7_118, %c0_119] : memref<36x128xf32, #tpu.memory_space<vmem>>, vector<1x128xf32>
    %258 = arith.addf %256, %257 : vector<1x128xf32>
    %c2_120 = arith.constant 2 : index
    %c0_121 = arith.constant 0 : index
    %259 = vector.load %arg4[%c2_120, %c0_121] : memref<4x128xf32, #tpu.memory_space<vmem>>, vector<1x128xf32>
    tpu.vector_store %arg4[%c2_120, %c0_121], %258 {strides = array<i32>} : memref<4x128xf32, #tpu.memory_space<vmem>>, vector<1x128xf32>,
    %c8 = arith.constant 8 : index
    %c0_122 = arith.constant 0 : index
    %c0_123 = arith.constant 0 : index
    %260 = vector.load %arg2[%c8, %c0_122, %c0_123] : memref<14x128x128xf32, #tpu.memory_space<vmem>>, vector<1x128x128xf32>
    %261 = vector.shape_cast %260 : vector<1x128x128xf32> to vector<128x128xf32>
    %cst_124 = arith.constant dense<0.000000e+00> : vector<1x128xf32>
    %262 = tpu.matmul %139, %261, %cst_124 {dimension_numbers = #tpu.dot_dimension_numbers<[1], [0], [0], [1], [0, 0, 1, 1], [], []>} : vector<1x128xf32>, vector<128x128xf32>, vector<1x128xf32> -> vector<1x128xf32>
    %c13_125 = arith.constant 13 : index
    %c0_126 = arith.constant 0 : index
    %c0_127 = arith.constant 0 : index
    %263 = vector.load %arg2[%c13_125, %c0_126, %c0_127] : memref<14x128x128xf32, #tpu.memory_space<vmem>>, vector<1x128x128xf32>
    %264 = vector.shape_cast %263 : vector<1x128x128xf32> to vector<128x128xf32>
    %cst_128 = arith.constant dense<0.000000e+00> : vector<1x128xf32>
    %265 = tpu.matmul %140, %264, %cst_128 {dimension_numbers = #tpu.dot_dimension_numbers<[1], [0], [0], [1], [0, 0, 1, 1], [], []>} : vector<1x128xf32>, vector<128x128xf32>, vector<1x128xf32> -> vector<1x128xf32>
    %266 = arith.addf %262, %265 : vector<1x128xf32>
    %c8_129 = arith.constant 8 : index
    %c0_130 = arith.constant 0 : index
    %267 = vector.load %arg3[%c8_129, %c0_130] : memref<36x128xf32, #tpu.memory_space<vmem>>, vector<1x128xf32>
    %268 = arith.addf %266, %267 : vector<1x128xf32>
    %c20 = arith.constant 20 : index
    %c0_131 = arith.constant 0 : index
    %269 = vector.load %arg3[%c20, %c0_131] : memref<36x128xf32, #tpu.memory_space<vmem>>, vector<1x128xf32>
    %c32 = arith.constant 32 : index
    %c0_132 = arith.constant 0 : index
    %270 = vector.load %arg3[%c32, %c0_132] : memref<36x128xf32, #tpu.memory_space<vmem>>, vector<1x128xf32>
    %c32_i32_133 = arith.constant 32 : i32
    %271 = vector.broadcast %c32_i32_133 : i32 to vector<1x128xi32>
    %272 = arith.cmpi slt, %0, %271 : vector<1x128xi32>
    %cst_134 = arith.constant 0.000000e+00 : f32
    %273 = vector.broadcast %cst_134 : f32 to vector<1x128xf32>
    %274 = arith.select %272, %268, %273 : vector<1x128xi1>, vector<1x128xf32>
    %cst_135 = arith.constant dense<0.000000e+00> : vector<1xf32>
    %275 = vector.multi_reduction <add>, %274, %cst_135 [1] : vector<1x128xf32> to vector<1xf32>
    %276 = vector.shape_cast %275 : vector<1xf32> to vector<1x1xf32>
    %cst_136 = arith.constant 3.125000e-02 : f32
    %277 = vector.broadcast %cst_136 : f32 to vector<1x1xf32>
    %278 = arith.mulf %276, %277 : vector<1x1xf32>
    %279 = vector.broadcast %278 : vector<1x1xf32> to vector<1x128xf32>
    %280 = arith.subf %268, %279 : vector<1x128xf32>
    %cst_137 = arith.constant 0.000000e+00 : f32
    %281 = vector.broadcast %cst_137 : f32 to vector<1x128xf32>
    %282 = arith.select %272, %280, %281 : vector<1x128xi1>, vector<1x128xf32>
    %283 = arith.mulf %282, %282 : vector<1x128xf32>
    %cst_138 = arith.constant dense<0.000000e+00> : vector<1xf32>
    %284 = vector.multi_reduction <add>, %283, %cst_138 [1] : vector<1x128xf32> to vector<1xf32>
    %285 = vector.shape_cast %284 : vector<1xf32> to vector<1x1xf32>
    %cst_139 = arith.constant 3.125000e-02 : f32
    %286 = vector.broadcast %cst_139 : f32 to vector<1x1xf32>
    %287 = arith.mulf %285, %286 : vector<1x1xf32>
    %cst_140 = arith.constant 9.99999974E-6 : f32
    %288 = vector.broadcast %cst_140 : f32 to vector<1x1xf32>
    %289 = arith.addf %287, %288 : vector<1x1xf32>
    %290 = math.rsqrt %289 : vector<1x1xf32>
    %291 = vector.broadcast %290 : vector<1x1xf32> to vector<1x128xf32>
    %292 = arith.mulf %282, %291 : vector<1x128xf32>
    %293 = arith.mulf %292, %269 : vector<1x128xf32>
    %294 = arith.addf %293, %270 : vector<1x128xf32>
    %cst_141 = arith.constant 0.000000e+00 : f32
    %295 = vector.broadcast %cst_141 : f32 to vector<1x128xf32>
    %296 = arith.cmpf oge, %294, %295 : vector<1x128xf32>
    %cst_142 = arith.constant 0.00999999977 : f32
    %297 = vector.broadcast %cst_142 : f32 to vector<1x128xf32>
    %298 = arith.mulf %297, %294 : vector<1x128xf32>
    %299 = arith.select %296, %294, %298 : vector<1x128xi1>, vector<1x128xf32>
    %c9 = arith.constant 9 : index
    %c0_143 = arith.constant 0 : index
    %c0_144 = arith.constant 0 : index
    %300 = vector.load %arg2[%c9, %c0_143, %c0_144] : memref<14x128x128xf32, #tpu.memory_space<vmem>>, vector<1x128x128xf32>
    %301 = vector.shape_cast %300 : vector<1x128x128xf32> to vector<128x128xf32>
    %cst_145 = arith.constant dense<0.000000e+00> : vector<1x128xf32>
    %302 = tpu.matmul %299, %301, %cst_145 {dimension_numbers = #tpu.dot_dimension_numbers<[1], [0], [0], [1], [0, 0, 1, 1], [], []>} : vector<1x128xf32>, vector<128x128xf32>, vector<1x128xf32> -> vector<1x128xf32>
    %c9_146 = arith.constant 9 : index
    %c0_147 = arith.constant 0 : index
    %303 = vector.load %arg3[%c9_146, %c0_147] : memref<36x128xf32, #tpu.memory_space<vmem>>, vector<1x128xf32>
    %304 = arith.addf %302, %303 : vector<1x128xf32>
    %c21 = arith.constant 21 : index
    %c0_148 = arith.constant 0 : index
    %305 = vector.load %arg3[%c21, %c0_148] : memref<36x128xf32, #tpu.memory_space<vmem>>, vector<1x128xf32>
    %c33 = arith.constant 33 : index
    %c0_149 = arith.constant 0 : index
    %306 = vector.load %arg3[%c33, %c0_149] : memref<36x128xf32, #tpu.memory_space<vmem>>, vector<1x128xf32>
    %c32_i32_150 = arith.constant 32 : i32
    %307 = vector.broadcast %c32_i32_150 : i32 to vector<1x128xi32>
    %308 = arith.cmpi slt, %0, %307 : vector<1x128xi32>
    %cst_151 = arith.constant 0.000000e+00 : f32
    %309 = vector.broadcast %cst_151 : f32 to vector<1x128xf32>
    %310 = arith.select %308, %304, %309 : vector<1x128xi1>, vector<1x128xf32>
    %cst_152 = arith.constant dense<0.000000e+00> : vector<1xf32>
    %311 = vector.multi_reduction <add>, %310, %cst_152 [1] : vector<1x128xf32> to vector<1xf32>
    %312 = vector.shape_cast %311 : vector<1xf32> to vector<1x1xf32>
    %cst_153 = arith.constant 3.125000e-02 : f32
    %313 = vector.broadcast %cst_153 : f32 to vector<1x1xf32>
    %314 = arith.mulf %312, %313 : vector<1x1xf32>
    %315 = vector.broadcast %314 : vector<1x1xf32> to vector<1x128xf32>
    %316 = arith.subf %304, %315 : vector<1x128xf32>
    %cst_154 = arith.constant 0.000000e+00 : f32
    %317 = vector.broadcast %cst_154 : f32 to vector<1x128xf32>
    %318 = arith.select %308, %316, %317 : vector<1x128xi1>, vector<1x128xf32>
    %319 = arith.mulf %318, %318 : vector<1x128xf32>
    %cst_155 = arith.constant dense<0.000000e+00> : vector<1xf32>
    %320 = vector.multi_reduction <add>, %319, %cst_155 [1] : vector<1x128xf32> to vector<1xf32>
    %321 = vector.shape_cast %320 : vector<1xf32> to vector<1x1xf32>
    %cst_156 = arith.constant 3.125000e-02 : f32
    %322 = vector.broadcast %cst_156 : f32 to vector<1x1xf32>
    %323 = arith.mulf %321, %322 : vector<1x1xf32>
    %cst_157 = arith.constant 9.99999974E-6 : f32
    %324 = vector.broadcast %cst_157 : f32 to vector<1x1xf32>
    %325 = arith.addf %323, %324 : vector<1x1xf32>
    %326 = math.rsqrt %325 : vector<1x1xf32>
    %327 = vector.broadcast %326 : vector<1x1xf32> to vector<1x128xf32>
    %328 = arith.mulf %318, %327 : vector<1x128xf32>
    %329 = arith.mulf %328, %305 : vector<1x128xf32>
    %330 = arith.addf %329, %306 : vector<1x128xf32>
    %cst_158 = arith.constant 0.000000e+00 : f32
    %331 = vector.broadcast %cst_158 : f32 to vector<1x128xf32>
    %332 = arith.cmpf oge, %330, %331 : vector<1x128xf32>
    %cst_159 = arith.constant 0.00999999977 : f32
    %333 = vector.broadcast %cst_159 : f32 to vector<1x128xf32>
    %334 = arith.mulf %333, %330 : vector<1x128xf32>
    %335 = arith.select %332, %330, %334 : vector<1x128xi1>, vector<1x128xf32>
    %c10 = arith.constant 10 : index
    %c0_160 = arith.constant 0 : index
    %c0_161 = arith.constant 0 : index
    %336 = vector.load %arg2[%c10, %c0_160, %c0_161] : memref<14x128x128xf32, #tpu.memory_space<vmem>>, vector<1x128x128xf32>
    %337 = vector.shape_cast %336 : vector<1x128x128xf32> to vector<128x128xf32>
    %cst_162 = arith.constant dense<0.000000e+00> : vector<1x128xf32>
    %338 = tpu.matmul %335, %337, %cst_162 {dimension_numbers = #tpu.dot_dimension_numbers<[1], [0], [0], [1], [0, 0, 1, 1], [], []>} : vector<1x128xf32>, vector<128x128xf32>, vector<1x128xf32> -> vector<1x128xf32>
    %c10_163 = arith.constant 10 : index
    %c0_164 = arith.constant 0 : index
    %339 = vector.load %arg3[%c10_163, %c0_164] : memref<36x128xf32, #tpu.memory_space<vmem>>, vector<1x128xf32>
    %340 = arith.addf %338, %339 : vector<1x128xf32>
    %c22 = arith.constant 22 : index
    %c0_165 = arith.constant 0 : index
    %341 = vector.load %arg3[%c22, %c0_165] : memref<36x128xf32, #tpu.memory_space<vmem>>, vector<1x128xf32>
    %c34 = arith.constant 34 : index
    %c0_166 = arith.constant 0 : index
    %342 = vector.load %arg3[%c34, %c0_166] : memref<36x128xf32, #tpu.memory_space<vmem>>, vector<1x128xf32>
    %c32_i32_167 = arith.constant 32 : i32
    %343 = vector.broadcast %c32_i32_167 : i32 to vector<1x128xi32>
    %344 = arith.cmpi slt, %0, %343 : vector<1x128xi32>
    %cst_168 = arith.constant 0.000000e+00 : f32
    %345 = vector.broadcast %cst_168 : f32 to vector<1x128xf32>
    %346 = arith.select %344, %340, %345 : vector<1x128xi1>, vector<1x128xf32>
    %cst_169 = arith.constant dense<0.000000e+00> : vector<1xf32>
    %347 = vector.multi_reduction <add>, %346, %cst_169 [1] : vector<1x128xf32> to vector<1xf32>
    %348 = vector.shape_cast %347 : vector<1xf32> to vector<1x1xf32>
    %cst_170 = arith.constant 3.125000e-02 : f32
    %349 = vector.broadcast %cst_170 : f32 to vector<1x1xf32>
    %350 = arith.mulf %348, %349 : vector<1x1xf32>
    %351 = vector.broadcast %350 : vector<1x1xf32> to vector<1x128xf32>
    %352 = arith.subf %340, %351 : vector<1x128xf32>
    %cst_171 = arith.constant 0.000000e+00 : f32
    %353 = vector.broadcast %cst_171 : f32 to vector<1x128xf32>
    %354 = arith.select %344, %352, %353 : vector<1x128xi1>, vector<1x128xf32>
    %355 = arith.mulf %354, %354 : vector<1x128xf32>
    %cst_172 = arith.constant dense<0.000000e+00> : vector<1xf32>
    %356 = vector.multi_reduction <add>, %355, %cst_172 [1] : vector<1x128xf32> to vector<1xf32>
    %357 = vector.shape_cast %356 : vector<1xf32> to vector<1x1xf32>
    %cst_173 = arith.constant 3.125000e-02 : f32
    %358 = vector.broadcast %cst_173 : f32 to vector<1x1xf32>
    %359 = arith.mulf %357, %358 : vector<1x1xf32>
    %cst_174 = arith.constant 9.99999974E-6 : f32
    %360 = vector.broadcast %cst_174 : f32 to vector<1x1xf32>
    %361 = arith.addf %359, %360 : vector<1x1xf32>
    %362 = math.rsqrt %361 : vector<1x1xf32>
    %363 = vector.broadcast %362 : vector<1x1xf32> to vector<1x128xf32>
    %364 = arith.mulf %354, %363 : vector<1x128xf32>
    %365 = arith.mulf %364, %341 : vector<1x128xf32>
    %366 = arith.addf %365, %342 : vector<1x128xf32>
    %cst_175 = arith.constant 0.000000e+00 : f32
    %367 = vector.broadcast %cst_175 : f32 to vector<1x128xf32>
    %368 = arith.cmpf oge, %366, %367 : vector<1x128xf32>
    %cst_176 = arith.constant 0.00999999977 : f32
    %369 = vector.broadcast %cst_176 : f32 to vector<1x128xf32>
    %370 = arith.mulf %369, %366 : vector<1x128xf32>
    %371 = arith.select %368, %366, %370 : vector<1x128xi1>, vector<1x128xf32>
    %c11 = arith.constant 11 : index
    %c0_177 = arith.constant 0 : index
    %c0_178 = arith.constant 0 : index
    %372 = vector.load %arg2[%c11, %c0_177, %c0_178] : memref<14x128x128xf32, #tpu.memory_space<vmem>>, vector<1x128x128xf32>
    %373 = vector.shape_cast %372 : vector<1x128x128xf32> to vector<128x128xf32>
    %cst_179 = arith.constant dense<0.000000e+00> : vector<1x128xf32>
    %374 = tpu.matmul %371, %373, %cst_179 {dimension_numbers = #tpu.dot_dimension_numbers<[1], [0], [0], [1], [0, 0, 1, 1], [], []>} : vector<1x128xf32>, vector<128x128xf32>, vector<1x128xf32> -> vector<1x128xf32>
    %c11_180 = arith.constant 11 : index
    %c0_181 = arith.constant 0 : index
    %375 = vector.load %arg3[%c11_180, %c0_181] : memref<36x128xf32, #tpu.memory_space<vmem>>, vector<1x128xf32>
    %376 = arith.addf %374, %375 : vector<1x128xf32>
    %c3_182 = arith.constant 3 : index
    %c0_183 = arith.constant 0 : index
    %377 = vector.load %arg4[%c3_182, %c0_183] : memref<4x128xf32, #tpu.memory_space<vmem>>, vector<1x128xf32>
    tpu.vector_store %arg4[%c3_182, %c0_183], %376 {strides = array<i32>} : memref<4x128xf32, #tpu.memory_space<vmem>>, vector<1x128xf32>,
    return
  }
}

</mosaic_0001>

<bundles_post_ra>
// kernel: icm_forward.1
= control target key start
LH: loop header
LB: loop body
LE: loop exit
PB: predicated region body
PF: predicated region fallthrough
CT: control target
= control target key end

     0   :  { %9 = vsyncpa [#allocation3], 0  ;;  %s2645_s15 = smov [#allocation2]   ;;  %s3004_s0 = inlined_call_operand.vmem [shape: f32[2,128], index: 0, kind: input, shape index: {}]   ;;  %s3005_s1 = inlined_call_operand.vmem [shape: f32[1,128], index: 1, kind: input, shape index: {}]   ;;  %s3006_s2 = inlined_call_operand.hbm [shape: f32[14,128,128], index: 2, kind: input, shape index: {}]   ;;  %s3007_s3 = inlined_call_operand.vmem [shape: f32[36,128], index: 3, kind: input, shape index: {}]   ;;  %s3008_s4 = inlined_call_operand.vmem [shape: f32[4,128], index: 4, kind: output, shape index: {}]  }
   0x1   :  { %s19_s16 = sshll.u32 %s2645_s15, 4  ;;  %s2621_s19 = scalar_lea.hbm %s3006_s2, 28672  ;;  %s20_s16 = int_to_ptr.vmem [resolvable:$true] %s19_s16 }
   0x2   :  { %p2622_p0 = scmp.ne.s32.totalorder %s3006_s2, %s2621_s19  ;;  %p2625_p1 = scmp.lt.u32.totalorder %s2621_s19, %s3006_s2 }
   0x4   :  { %p2627_p2 = pnand %p2625_p1, %p2622_p0 }
   0x6   :  { %2630 = shalt.err (!%p2627_p2)
}
   0x7   :  { %s2631_s24 = scalar_lea.vmem %s20_s16, 28672  ;;  %p2636_p4 = scmp.lt.s32.totalorder %s20_s16, %s20_s16 }
   0x8   :  { %p2632_p3 = scmp.ne.s32.totalorder %s20_s16, %s2631_s24  ;;  %p2637_p5 = scmp.lt.s32.totalorder %s2631_s24, %s2631_s24 }
   0xa   :  { %p2638_p6 = por %p2637_p5, %p2636_p4 }
   0xc   :  { %p2639_p7 = pnand %p2638_p6, %p2632_p3 }
   0xe   :  { %2642 = shalt.err (!%p2639_p7)
}
   0xf   :  { %s2646_s25 = smov 128   ;;  %s2647_s26 = smov 8  }
  0x10   :  { %25 = dma.hbm_to_vmem [thread:$0]  %s3006_s2, 28672, %s20_s16, [#allocation3], %s2646_s25, %s2646_s25, %s2647_s26  }
  0x11   :  { %2643 = dma.done.wait [#allocation3], 28672  }
  0x12   :  { %2644 = vsyncadd [#allocation3], 4294938624  ;;  %v2648_v0 = vmov 0.0|0.0   ;;  %vm2649_vm0 = vmmov 0   ;;  %v2650_v1 = vmov 0.0   ;;  %v34_v2 = vld [vmem:[#allocation2] sm:$0xff]  ;;  %v31_v27 = vlaneseq }
  0x13   :  { %2259 = vmatprep.subr.bf16.mxu0 %v2648_v0  ;;  %1801 = vmatprep.mubr.msk.f32.mxu0 %vm2649_vm0, %v2650_v1  ;;  %v35_v3 = vld [vmem:[#allocation2 + $0x8] sm:$0xff]  ;;  %v36_v4 = vld [vmem:[#allocation2 + $0x10] sm:$0xff]  ;;  %v37_v6 = vld [vmem:[#allocation2 + $0x18] sm:$0xff]  ;;  %vm131_vm2 = vcmask 1041408   ;;  %vm677_vm6 = vcmask 1040384  }
  0x14   :  { %2283 = vmatprep.subr.bf16.mxu1 %v2648_v0  ;;  %1836 = vmatprep.mubr.msk.f32.mxu1 %vm2649_vm0, %v2650_v1  ;;  %v2260_v5 = vpack.c.bf16 %v35_v3, %v34_v2  ;;  %v2263_v7 = vpack.c.bf16 %v37_v6, %v36_v4  ;;  %v38_v8 = vld [vmem:[#allocation2 + $0x20] sm:$0xff]  ;;  %v39_v9 = vld [vmem:[#allocation2 + $0x28] sm:$0xff]  ;;  %v40_v11 = vld [vmem:[#allocation2 + $0x30] sm:$0xff]  ;;  %v2707_v28 = vand.u32 127, %v31_v27 }
  0x15   :  { %v2266_v10 = vpack.c.bf16 %v39_v9, %v38_v8  ;;  %v41_v12 = vld [vmem:[#allocation2 + $0x38] sm:$0xff]  ;;  %v42_v14 = vld [vmem:[#allocation2 + $0x40] sm:$0xff]  ;;  %v43_v15 = vld [vmem:[#allocation2 + $0x48] sm:$0xff] }
  0x16   :  { %2261 = vmatpush3.bf16.msra.mxu0 %v2260_v5  ;;  %v2269_v13 = vpack.c.bf16 %v41_v12, %v40_v11  ;;  %v2272_v16 = vpack.c.bf16 %v43_v15, %v42_v14  ;;  %v44_v17 = vld [vmem:[#allocation2 + $0x50] sm:$0xff]  ;;  %v45_v18 = vld [vmem:[#allocation2 + $0x58] sm:$0xff]  ;;  %v46_v20 = vld [vmem:[#allocation2 + $0x60] sm:$0xff]  ;;  %vm127_vm1 = vcmp.lt.s32.totalorder %v2707_v28, 32 }
  0x17   :  { %2262 = vmatprep.subr.bf16.mxu0 %v2648_v0  ;;  %v2275_v19 = vpack.c.bf16 %v45_v18, %v44_v17  ;;  %v47_v21 = vld [vmem:[#allocation2 + $0x68] sm:$0xff]  ;;  %v48_v23 = vld [vmem:[#allocation2 + $0x70] sm:$0xff]  ;;  %v49_v24 = vld [vmem:[#allocation2 + $0x78] sm:$0xff] }
  0x18   :  { %v2278_v22 = vpack.c.bf16 %v47_v21, %v46_v20  ;;  %v2281_v25 = vpack.c.bf16 %v49_v24, %v48_v23  ;;  %v33_v26 = vld [vmem:[%s3004_s0] sm:$0x3]  ;;  %v161_v36 = vld [vmem:[#allocation2 + $0x88] sm:$0xff]  ;;  %v162_v37 = vld [vmem:[#allocation2 + $0x90] sm:$0xff] }
  0x19   :  { %v1521_v29 = vld [vmem:[%s3007_s3] ss:$0 sm:$0xff]  ;;  %v163_v39 = vld [vmem:[#allocation2 + $0x98] sm:$0xff]  ;;  %v165_v48 = vld [vmem:[#allocation2 + $0xa8] sm:$0xff] }
  0x1a   :  { %2264 = vmatpush3.bf16.msra.mxu0 %v2263_v7  ;;  %v160_v35 = vld [vmem:[#allocation2 + $0x80] sm:$0xff]  ;;  %v2287_v40 = vpack.c.bf16 %v163_v39, %v162_v37  ;;  %v166_v50 = vld [vmem:[#allocation2 + $0xb0] sm:$0xff]  ;;  %v167_v51 = vld [vmem:[#allocation2 + $0xb8] sm:$0xff] }
  0x1b   :  { %2265 = vmatprep.subr.bf16.mxu0 %v2648_v0  ;;  %v2284_v38 = vpack.c.bf16 %v161_v36, %v160_v35  ;;  %v164_v47 = vld [vmem:[#allocation2 + $0xa0] sm:$0xff]  ;;  %v2293_v52 = vpack.c.bf16 %v167_v51, %v166_v50  ;;  %v169_v54 = vld [vmem:[#allocation2 + $0xc8] sm:$0xff]  ;;  %v170_v56 = vld [vmem:[#allocation2 + $0xd0] sm:$0xff] }
  0x1c   :  { %v2290_v49 = vpack.c.bf16 %v165_v48, %v164_v47  ;;  %v168_v53 = vld [vmem:[#allocation2 + $0xc0] sm:$0xff]  ;;  %v171_v57 = vld [vmem:[#allocation2 + $0xd8] sm:$0xff]  ;;  %v173_v60 = vld [vmem:[#allocation2 + $0xe8] sm:$0xff] }
  0x1d   :  { %2285 = vmatpush3.bf16.msra.mxu1 %v2284_v38  ;;  %v2296_v55 = vpack.c.bf16 %v169_v54, %v168_v53  ;;  %v2299_v58 = vpack.c.bf16 %v171_v57, %v170_v56  ;;  %v172_v59 = vld [vmem:[#allocation2 + $0xe0] sm:$0xff]  ;;  %v174_v62 = vld [vmem:[#allocation2 + $0xf0] sm:$0xff]  ;;  %v175_v63 = vld [vmem:[#allocation2 + $0xf8] sm:$0xff] }
  0x1e   :  { %2267 = vmatpush3.bf16.msra.mxu0 %v2266_v10  ;;  %2286 = vmatprep.subr.bf16.mxu1 %v2648_v0  ;;  %v2302_v61 = vpack.c.bf16 %v173_v60, %v172_v59  ;;  %v2305_v2 = vpack.c.bf16 %v175_v63, %v174_v62  ;;  %v1522_v7 = vld [vmem:[%s3007_s3 + $0xc] ss:$0 sm:$0xff]  ;;  %v1523_v9 = vld [vmem:[%s3007_s3 + $0x18] ss:$0 sm:$0xff]  ;;  %v1524_v14 = vld [vmem:[%s3007_s3 + $0x1] ss:$0 sm:$0xff] }
  0x1f   :  { %2268 = vmatprep.subr.bf16.mxu0 %v2648_v0  ;;  %v282_v20 = vld [vmem:[#allocation2 + $0x100] sm:$0xff]  ;;  %v283_v21 = vld [vmem:[#allocation2 + $0x108] sm:$0xff]  ;;  %v285_v24 = vld [vmem:[#allocation2 + $0x118] sm:$0xff] }
  0x20   :  { %v2308_v23 = vpack.c.bf16 %v283_v21, %v282_v20  ;;  %v288_v36 = vld [vmem:[#allocation2 + $0x130] sm:$0xff]  ;;  %v289_v37 = vld [vmem:[#allocation2 + $0x138] sm:$0xff]  ;;  %v290_v39 = vld [vmem:[#allocation2 + $0x140] sm:$0xff] }
  0x21   :  { %2288 = vmatpush3.bf16.msra.mxu1 %v2287_v40  ;;  %v2317_v38 = vpack.c.bf16 %v289_v37, %v288_v36  ;;  %v291_v40 = vld [vmem:[#allocation2 + $0x148] sm:$0xff]  ;;  %v296_v48 = vld [vmem:[#allocation2 + $0x170] sm:$0xff]  ;;  %v1526_v57 = vld [vmem:[%s3007_s3 + $0x19] ss:$0 sm:$0xff] }
  0x22   :  { %2270 = vmatpush3.bf16.msra.mxu0 %v2269_v13  ;;  %2289 = vmatprep.subr.bf16.mxu1 %v2648_v0  ;;  %v1527_v62 = vld [vmem:[%s3007_s3 + $0x2] ss:$0 sm:$0xff]  ;;  %v410_v21 = vld [vmem:[#allocation2 + $0x1b0] sm:$0xff] }
  0x23   :  { %2271 = vmatprep.subr.bf16.mxu0 %v2648_v0  ;;  %v516_v37 = vld [vmem:[#allocation2 + $0x600] sm:$0xff] }
  0x25   :  { %2291 = vmatpush3.bf16.msra.mxu1 %v2290_v49  ;;  %v297_v49 = vld [vmem:[#allocation2 + $0x178] sm:$0xff] }
  0x26   :  { %2273 = vmatpush3.bf16.msra.mxu0 %v2272_v16  ;;  %2292 = vmatprep.subr.bf16.mxu1 %v2648_v0  ;;  %v2329_v50 = vpack.c.bf16 %v297_v49, %v296_v48  ;;  %v524_v49 = vld [vmem:[#allocation2 + $0x640] sm:$0xff] }
  0x27   :  { %2274 = vmatprep.subr.bf16.mxu0 %v2648_v0 }
  0x29   :  { %2294 = vmatpush3.bf16.msra.mxu1 %v2293_v52 }
  0x2a   :  { %2276 = vmatpush3.bf16.msra.mxu0 %v2275_v19  ;;  %2295 = vmatprep.subr.bf16.mxu1 %v2648_v0 }
  0x2b   :  { %2277 = vmatprep.subr.bf16.mxu0 %v2648_v0 }
  0x2d   :  { %2297 = vmatpush3.bf16.msra.mxu1 %v2296_v55  ;;  %v1525_v55 = vld [vmem:[%s3007_s3 + $0xd] ss:$0 sm:$0xff] }
  0x2e   :  { %2279 = vmatpush3.bf16.msra.mxu0 %v2278_v22  ;;  %2298 = vmatprep.subr.bf16.mxu1 %v2648_v0  ;;  %v284_v22 = vld [vmem:[#allocation2 + $0x110] sm:$0xff] }
  0x2f   :  { %2280 = vmatprep.subr.bf16.mxu0 %v2648_v0 }
  0x31   :  { %2300 = vmatpush3.bf16.msra.mxu1 %v2299_v58 }
  0x32   :  { %2282 = vmatpush3.bf16.msra.mxu0 %v2281_v25  ;;  %2301 = vmatprep.subr.bf16.mxu1 %v2648_v0  ;;  %v2311_v25 = vpack.c.bf16 %v285_v24, %v284_v22  ;;  %v411_v22 = vld [vmem:[#allocation2 + $0x1b8] sm:$0xff]  ;;  %v412_v24 = vld [vmem:[#allocation2 + $0x1c0] sm:$0xff] }
  0x33   :  { %2307 = vmatprep.subr.bf16.mxu0 %v2648_v0 }
  0x35   :  { %1802 = vmatmul.mubr.f32.vlgmr.msra.gmra.mrb[0].mxu0 %v33_v26  ;;  %2303 = vmatpush3.bf16.msra.mxu1 %v2302_v61 }
  0x36   :  { %1871 = vmatprep.mubr.msk.f32.mxu0 %vm2649_vm0, %v2650_v1  ;;  %2304 = vmatprep.subr.bf16.mxu1 %v2648_v0 }
  0x37   :  { %2309 = vmatpush3.bf16.msra.mxu0 %v2308_v23  ;;  %v2341_v23 = vpack.c.bf16 %v411_v22, %v410_v21  ;;  %v528_v22 = vld [vmem:[#allocation2 + $0x660] sm:$0xff] }
  0x38   :  { %2310 = vmatprep.subr.bf16.mxu0 %v2648_v0 }
  0x39   :  { %2306 = vmatpush3.bf16.msra.mxu1 %v2305_v2 }
  0x3a   :  { %2331 = vmatprep.subr.bf16.mxu1 %v2648_v0 }
  0x3b   :  { %2312 = vmatpush3.bf16.msra.mxu0 %v2311_v25  ;;  %v413_v25 = vld [vmem:[#allocation2 + $0x1c8] sm:$0xff] }
  0x3c   :  { %2313 = vmatprep.subr.bf16.mxu0 %v2648_v0 }
 0x108   :  { %v121_v30 = vpop.f32.mrb[0].mxu0 }
 0x109   :  { %v122_v31 = vadd.f32 %v1521_v29, %v121_v30  ;;  %v1803_v32 = vpop.f32.mrb[1].mxu0 }
 0x10b   :  { %v130_v33 = vsel %vm127_vm1, %v122_v31, 0.0 }
 0x10c   :  { %v132_v34 = vsel %vm131_vm2, %v130_v33, 0.0  ;;  %v286_v33 = vld [vmem:[#allocation2 + $0x120] sm:$0xff] }
 0x10d   :  { %133 = vadd.xlane.f32.xlu0 %v132_v34  ;;  %v287_v34 = vld [vmem:[#allocation2 + $0x128] sm:$0xff] }
 0x10e   :  { %v2314_v35 = vpack.c.bf16 %v287_v34, %v286_v33  ;;  %v418_v34 = vld [vmem:[#allocation2 + $0x1f0] sm:$0xff] }
 0x110   :  { %2315 = vmatpush3.bf16.msra.mxu0 %v2314_v35  ;;  %v419_v35 = vld [vmem:[#allocation2 + $0x1f8] sm:$0xff] }
 0x111   :  { %2316 = vmatprep.subr.bf16.mxu0 %v2648_v0  ;;  %v2353_v36 = vpack.c.bf16 %v419_v35, %v418_v34  ;;  %v497_v35 = vld [vmem:[%s3005_s1] sm:$0x1] }
 0x114   :  { %2318 = vmatpush3.bf16.msra.mxu0 %v2317_v38  ;;  %v517_v38 = vld [vmem:[#allocation2 + $0x608] sm:$0xff] }
 0x115   :  { %2319 = vmatprep.subr.bf16.mxu0 %v2648_v0 }
 0x19a   :  { %v134_v41 = vpop.xlane.xlu0 %133 }
 0x19b   :  { %v135_v42 = vmul.f32 0.03125, %v134_v41  ;;  %v2320_v41 = vpack.c.bf16 %v291_v40, %v290_v39  ;;  %v2356_v39 = vpack.c.bf16 %v517_v38, %v516_v37  ;;  %v518_v40 = vld [vmem:[#allocation2 + $0x610] sm:$0xff] }
 0x19d   :  { %v136_v43 = vsub.f32 %v122_v31, %v135_v42  ;;  %v292_v42 = vld [vmem:[#allocation2 + $0x150] sm:$0xff]  ;;  %2321 = vmatpush3.bf16.msra.mxu0 %v2320_v41  ;;  %v519_v41 = vld [vmem:[#allocation2 + $0x618] sm:$0xff] }
 0x19e   :  { %2322 = vmatprep.subr.bf16.mxu0 %v2648_v0 }
 0x19f   :  { %v137_v44 = vsel %vm127_vm1, %v136_v43, 0.0  ;;  %v293_v43 = vld [vmem:[#allocation2 + $0x158] sm:$0xff] }
 0x1a0   :  { %v138_v45 = vmul.f32 %v137_v44, %v137_v44 }
 0x1a2   :  { %v139_v46 = vsel %vm131_vm2, %v138_v45, 0.0  ;;  %v294_v45 = vld [vmem:[#allocation2 + $0x160] sm:$0xff] }
 0x1a3   :  { %140 = vadd.xlane.f32.xlu0 %v139_v46  ;;  %v295_v46 = vld [vmem:[#allocation2 + $0x168] sm:$0xff] }
 0x1a4   :  { %v2326_v47 = vpack.c.bf16 %v295_v46, %v294_v45  ;;  %v522_v46 = vld [vmem:[#allocation2 + $0x630] sm:$0xff] }
 0x230   :  { %v141_v3 = vpop.xlane.xlu0 %140 }
 0x231   :  { %v142_v4 = vmul.f32 0.03125, %v141_v3 }
 0x233   :  { %v143_v5 = vadd.f32 1e-05, %v142_v4 }
 0x235   :  { %2601 = vrsqrt.f32 %v143_v5 }
 0x23f   :  { %v2602_v6 = vpop.eup %2601 }
 0x240   :  { %v145_v8 = vmul.f32 %v2602_v6, %v137_v44  ;;  %v2323_v44 = vpack.c.bf16 %v293_v43, %v292_v42  ;;  %v404_v6 = vld [vmem:[#allocation2 + $0x180] sm:$0xff]  ;;  %v2359_v42 = vpack.c.bf16 %v519_v41, %v518_v40 }
 0x241   :  { %v520_v43 = vld [vmem:[#allocation2 + $0x620] sm:$0xff] }
 0x242   :  { %v150_v10 = vmul.f32 %v1522_v7, %v145_v8  ;;  %2324 = vmatpush3.bf16.msra.mxu0 %v2323_v44  ;;  %v405_v7 = vld [vmem:[#allocation2 + $0x188] sm:$0xff]  ;;  %v406_v8 = vld [vmem:[#allocation2 + $0x190] sm:$0xff] }
 0x243   :  { %2325 = vmatprep.subr.bf16.mxu0 %v2648_v0  ;;  %v521_v44 = vld [vmem:[#allocation2 + $0x628] sm:$0xff] }
 0x244   :  { %v155_v11 = vadd.f32 %v1523_v9, %v150_v10  ;;  %v2332_v9 = vpack.c.bf16 %v405_v7, %v404_v6  ;;  %v407_v10 = vld [vmem:[#allocation2 + $0x198] sm:$0xff]  ;;  %v2362_v45 = vpack.c.bf16 %v521_v44, %v520_v43  ;;  %v503_v7 = vld [vmem:[#allocation2 + $0x220] sm:$0xff] }
 0x245   :  { %v672_v44 = vld [vmem:[%s3007_s3 + $0x4] sm:$0x1] }
 0x246   :  { %vm156_vm3 = vcmp.ge.f32.partialorder %v155_v11, 0.0  ;;  %v157_v12 = vmul.f32 0.01, %v155_v11  ;;  %2327 = vmatpush3.bf16.msra.mxu0 %v2326_v47  ;;  %v523_v47 = vld [vmem:[#allocation2 + $0x638] sm:$0xff] }
 0x247   :  { %2328 = vmatprep.subr.bf16.mxu0 %v2648_v0  ;;  %v2365_v48 = vpack.c.bf16 %v523_v47, %v522_v46 }
 0x248   :  { %v158_v13 = vsel %vm156_vm3, %v155_v11, %v157_v12  ;;  %v2335_v11 = vpack.c.bf16 %v407_v10, %v406_v8  ;;  %v504_v8 = vld [vmem:[#allocation2 + $0x228] sm:$0xff]  ;;  %v505_v10 = vld [vmem:[#allocation2 + $0x230] sm:$0xff] }
 0x249   :  { %1837 = vmatmul.mubr.f32.vlgmr.msra.gmra.mrb[0].mxu1 %v158_v13 }
 0x24a   :  { %1906 = vmatprep.mubr.msk.f32.mxu1 %vm2649_vm0, %v2650_v1  ;;  %2330 = vmatpush3.bf16.msra.mxu0 %v2329_v50  ;;  %v525_v50 = vld [vmem:[#allocation2 + $0x648] sm:$0xff] }
 0x24b   :  { %2355 = vmatprep.subr.bf16.mxu0 %v2648_v0  ;;  %2333 = vmatpush3.bf16.msra.mxu1 %v2332_v9  ;;  %v2386_v9 = vpack.c.bf16 %v504_v8, %v503_v7  ;;  %v707_v7 = vld [vmem:[#allocation2 + $0x2c8] sm:$0xff] }
 0x24c   :  { %2334 = vmatprep.subr.bf16.mxu1 %v2648_v0 }
 0x24f   :  { %2336 = vmatpush3.bf16.msra.mxu1 %v2335_v11  ;;  %v506_v11 = vld [vmem:[#allocation2 + $0x238] sm:$0xff] }
 0x250   :  { %2337 = vmatprep.subr.bf16.mxu1 %v2648_v0 }
 0x31c   :  { %v247_v15 = vpop.f32.mrb[0].mxu1 }
 0x31d   :  { %v248_v16 = vadd.f32 %v1524_v14, %v247_v15  ;;  %v1838_v17 = vpop.f32.mrb[1].mxu1 }
 0x31f   :  { %v253_v18 = vsel %vm127_vm1, %v248_v16, 0.0 }
 0x320   :  { %v254_v19 = vsel %vm131_vm2, %v253_v18, 0.0  ;;  %v408_v18 = vld [vmem:[#allocation2 + $0x1a0] sm:$0xff] }
 0x321   :  { %255 = vadd.xlane.f32.xlu1 %v254_v19  ;;  %v409_v19 = vld [vmem:[#allocation2 + $0x1a8] sm:$0xff] }
 0x322   :  { %v2338_v20 = vpack.c.bf16 %v409_v19, %v408_v18  ;;  %v509_v19 = vld [vmem:[#allocation2 + $0x250] sm:$0xff] }
 0x324   :  { %2339 = vmatpush3.bf16.msra.mxu1 %v2338_v20  ;;  %v510_v20 = vld [vmem:[#allocation2 + $0x258] sm:$0xff] }
 0x325   :  { %2340 = vmatprep.subr.bf16.mxu1 %v2648_v0  ;;  %v2395_v21 = vpack.c.bf16 %v510_v20, %v509_v19 }
 0x328   :  { %2342 = vmatpush3.bf16.msra.mxu1 %v2341_v23  ;;  %v529_v23 = vld [vmem:[#allocation2 + $0x668] sm:$0xff] }
 0x329   :  { %2343 = vmatprep.subr.bf16.mxu1 %v2648_v0 }
 0x3ae   :  { %v256_v26 = vpop.xlane.xlu1 %255 }
 0x3af   :  { %v257_v27 = vmul.f32 0.03125, %v256_v26  ;;  %v2344_v26 = vpack.c.bf16 %v413_v25, %v412_v24  ;;  %v2374_v24 = vpack.c.bf16 %v529_v23, %v528_v22  ;;  %v511_v25 = vld [vmem:[#allocation2 + $0x260] sm:$0xff]  ;;  %v674_v22 = vld [vmem:[%s3007_s3 + $0x10] sm:$0x1] }
 0x3b1   :  { %v258_v29 = vsub.f32 %v248_v16, %v257_v27  ;;  %v414_v27 = vld [vmem:[#allocation2 + $0x1d0] sm:$0xff]  ;;  %2345 = vmatpush3.bf16.msra.mxu1 %v2344_v26  ;;  %v512_v26 = vld [vmem:[#allocation2 + $0x268] sm:$0xff] }
 0x3b2   :  { %2346 = vmatprep.subr.bf16.mxu1 %v2648_v0 }
 0x3b3   :  { %v259_v30 = vsel %vm127_vm1, %v258_v29, 0.0  ;;  %v415_v29 = vld [vmem:[#allocation2 + $0x1d8] sm:$0xff] }
 0x3b4   :  { %v260_v31 = vmul.f32 %v259_v30, %v259_v30 }
 0x3b6   :  { %v261_v32 = vsel %vm131_vm2, %v260_v31, 0.0  ;;  %v416_v31 = vld [vmem:[#allocation2 + $0x1e0] sm:$0xff] }
 0x3b7   :  { %262 = vadd.xlane.f32.xlu1 %v261_v32  ;;  %v417_v32 = vld [vmem:[#allocation2 + $0x1e8] sm:$0xff] }
 0x3b8   :  { %v2350_v33 = vpack.c.bf16 %v417_v32, %v416_v31  ;;  %v513_v32 = vld [vmem:[#allocation2 + $0x270] sm:$0xff] }
 0x444   :  { %v263_v51 = vpop.xlane.xlu1 %262 }
 0x445   :  { %v264_v52 = vmul.f32 0.03125, %v263_v51  ;;  %v2368_v51 = vpack.c.bf16 %v525_v50, %v524_v49  ;;  %v698_v50 = vld [vmem:[#allocation2 + $0x280] sm:$0xff] }
 0x447   :  { %v265_v53 = vadd.f32 1e-05, %v264_v52 }
 0x449   :  { %2603 = vrsqrt.f32 %v265_v53 }
 0x453   :  { %v2604_v54 = vpop.eup %2603 }
 0x454   :  { %v267_v56 = vmul.f32 %v2604_v54, %v259_v30  ;;  %v2347_v30 = vpack.c.bf16 %v415_v29, %v414_v27  ;;  %v2398_v27 = vpack.c.bf16 %v512_v26, %v511_v25  ;;  %v530_v29 = vld [vmem:[#allocation2 + $0x670] sm:$0xff] }
 0x456   :  { %v272_v58 = vmul.f32 %v1525_v55, %v267_v56  ;;  %2348 = vmatpush3.bf16.msra.mxu1 %v2347_v30  ;;  %v1528_v56 = vld [vmem:[%s3007_s3 + $0xe] ss:$0 sm:$0xff]  ;;  %v531_v30 = vld [vmem:[#allocation2 + $0x678] sm:$0xff] }
 0x457   :  { %2349 = vmatprep.subr.bf16.mxu1 %v2648_v0  ;;  %v2377_v31 = vpack.c.bf16 %v531_v30, %v530_v29  ;;  %v714_v30 = vld [vmem:[%s3007_s3 + $0x5] sm:$0x1] }
 0x458   :  { %v277_v59 = vadd.f32 %v1526_v57, %v272_v58  ;;  %v1529_v58 = vld [vmem:[%s3007_s3 + $0x1a] ss:$0 sm:$0xff] }
 0x45a   :  { %vm278_vm4 = vcmp.ge.f32.partialorder %v277_v59, 0.0  ;;  %v279_v60 = vmul.f32 0.01, %v277_v59  ;;  %2351 = vmatpush3.bf16.msra.mxu1 %v2350_v33  ;;  %v514_v33 = vld [vmem:[#allocation2 + $0x278] sm:$0xff] }
 0x45b   :  { %2352 = vmatprep.subr.bf16.mxu1 %v2648_v0  ;;  %v2401_v34 = vpack.c.bf16 %v514_v33, %v513_v32 }
 0x45c   :  { %v280_v61 = vsel %vm278_vm4, %v277_v59, %v279_v60  ;;  %v499_v60 = vld [vmem:[#allocation2 + $0x200] sm:$0xff] }
 0x45d   :  { %1872 = vmatmul.mubr.f32.vlgmr.msra.gmra.mrb[2].mxu0 %v280_v61  ;;  %v500_v61 = vld [vmem:[#allocation2 + $0x208] sm:$0xff] }
 0x45e   :  { %1941 = vmatprep.mubr.msk.f32.mxu0 %vm2649_vm0, %v2650_v1  ;;  %2354 = vmatpush3.bf16.msra.mxu1 %v2353_v36  ;;  %v1530_v36 = vld [vmem:[%s3007_s3 + $0x3] ss:$0 sm:$0xff] }
 0x45f   :  { %2379 = vmatprep.subr.bf16.mxu1 %v2648_v0  ;;  %2357 = vmatpush3.bf16.msra.mxu0 %v2356_v39 }
 0x460   :  { %2358 = vmatprep.subr.bf16.mxu0 %v2648_v0 }
 0x463   :  { %2360 = vmatpush3.bf16.msra.mxu0 %v2359_v42 }
 0x464   :  { %2361 = vmatprep.subr.bf16.mxu0 %v2648_v0 }
 0x467   :  { %2363 = vmatpush3.bf16.msra.mxu0 %v2362_v45 }
 0x468   :  { %2364 = vmatprep.subr.bf16.mxu0 %v2648_v0 }
 0x46b   :  { %2366 = vmatpush3.bf16.msra.mxu0 %v2365_v48 }
 0x46c   :  { %2367 = vmatprep.subr.bf16.mxu0 %v2648_v0 }
 0x46f   :  { %2369 = vmatpush3.bf16.msra.mxu0 %v2368_v51  ;;  %v699_v51 = vld [vmem:[#allocation2 + $0x288] sm:$0xff] }
 0x470   :  { %2370 = vmatprep.subr.bf16.mxu0 %v2648_v0 }
 0x530   :  { %v369_v63 = vpop.f32.mrb[2].mxu0 }
 0x531   :  { %v370_v2 = vadd.f32 %v1527_v62, %v369_v63  ;;  %v1873_v3 = vpop.f32.mrb[3].mxu0 }
 0x532   :  { %v501_v3 = vld [vmem:[#allocation2 + $0x210] sm:$0xff] }
 0x533   :  { %v375_v4 = vsel %vm127_vm1, %v370_v2, 0.0 }
 0x534   :  { %v376_v5 = vsel %vm131_vm2, %v375_v4, 0.0  ;;  %v502_v4 = vld [vmem:[#allocation2 + $0x218] sm:$0xff] }
 0x535   :  { %377 = vadd.xlane.f32.xlu0 %v376_v5  ;;  %v2383_v6 = vpack.c.bf16 %v502_v4, %v501_v3  ;;  %v704_v3 = vld [vmem:[#allocation2 + $0x2b0] sm:$0xff]  ;;  %v705_v4 = vld [vmem:[#allocation2 + $0x2b8] sm:$0xff] }
 0x5c2   :  { %v378_v12 = vpop.xlane.xlu0 %377 }
 0x5c3   :  { %v379_v13 = vmul.f32 0.03125, %v378_v12  ;;  %v2389_v12 = vpack.c.bf16 %v506_v11, %v505_v10  ;;  %v709_v10 = vld [vmem:[#allocation2 + $0x2d8] sm:$0xff] }
 0x5c5   :  { %v380_v14 = vsub.f32 %v370_v2, %v379_v13  ;;  %v2380_v2 = vpack.c.bf16 %v500_v61, %v499_v60  ;;  %v507_v13 = vld [vmem:[#allocation2 + $0x240] sm:$0xff] }
 0x5c7   :  { %v2770_v15 = vsel %vm127_vm1, %v380_v14, 0.0  ;;  %v508_v14 = vld [vmem:[#allocation2 + $0x248] sm:$0xff] }
 0x5c8   :  { %v382_v16 = vmul.f32 %v2770_v15, %v2770_v15 }
 0x5ca   :  { %v383_v17 = vsel %vm131_vm2, %v382_v16, 0.0  ;;  %v526_v16 = vld [vmem:[#allocation2 + $0x650] sm:$0xff] }
 0x5cb   :  { %384 = vadd.xlane.f32.xlu1 %v383_v17  ;;  %v527_v17 = vld [vmem:[#allocation2 + $0x658] sm:$0xff] }
 0x5cc   :  { %v2371_v18 = vpack.c.bf16 %v527_v17, %v526_v16  ;;  %v713_v16 = vld [vmem:[#allocation2 + $0x2f8] sm:$0xff] }
 0x5ce   :  { %2372 = vmatpush3.bf16.msra.mxu0 %v2371_v18 }
 0x5cf   :  { %2373 = vmatprep.subr.bf16.mxu0 %v2648_v0 }
 0x5d2   :  { %2375 = vmatpush3.bf16.msra.mxu0 %v2374_v24  ;;  %v675_v24 = vld [vmem:[%s3007_s3 + $0x1c] sm:$0x1] }
 0x5d3   :  { %2376 = vmatprep.subr.bf16.mxu0 %v2648_v0 }
 0x5d6   :  { %2378 = vmatpush3.bf16.msra.mxu0 %v2377_v31 }
 0x5d7   :  { %2403 = vmatprep.subr.bf16.mxu0 %v2648_v0 }
 0x5d9   :  { %1942 = vmatmul.mubr.f32.vlgmr.msra.gmra.mrb[4].mxu0 %v497_v35 }
 0x5da   :  { %2011 = vmatprep.mubr.msk.f32.mxu0 %vm2649_vm0, %v2650_v1 }
 0x658   :  { %v385_v52 = vpop.xlane.xlu1 %384 }
 0x659   :  { %v386_v53 = vmul.f32 0.03125, %v385_v52  ;;  %v700_v52 = vld [vmem:[#allocation2 + $0x290] sm:$0xff] }
 0x65b   :  { %v387_v54 = vadd.f32 1e-05, %v386_v53  ;;  %v2404_v53 = vpack.c.bf16 %v699_v51, %v698_v50  ;;  %v813_v50 = vld [vmem:[#allocation2 + $0x328] sm:$0xff] }
 0x65d   :  { %2605 = vrsqrt.f32 %v387_v54  ;;  %v701_v54 = vld [vmem:[#allocation2 + $0x298] sm:$0xff]  ;;  %2405 = vmatpush3.bf16.msra.mxu0 %v2404_v53 }
 0x65e   :  { %2406 = vmatprep.subr.bf16.mxu0 %v2648_v0  ;;  %v815_v53 = vld [vmem:[#allocation2 + $0x338] sm:$0xff] }
 0x667   :  { %v2606_v55 = vpop.eup %2605 }
 0x668   :  { %v389_v57 = vmul.f32 %v2606_v55, %v2770_v15  ;;  %v2392_v15 = vpack.c.bf16 %v508_v14, %v507_v13  ;;  %v2407_v55 = vpack.c.bf16 %v701_v54, %v700_v52  ;;  %v711_v13 = vld [vmem:[#allocation2 + $0x2e8] sm:$0xff]  ;;  %v814_v52 = vld [vmem:[#allocation2 + $0x330] sm:$0xff] }
 0x669   :  { %v2437_v54 = vpack.c.bf16 %v815_v53, %v814_v52  ;;  %v921_v53 = vld [vmem:[#allocation2 + $0x398] sm:$0xff] }
 0x66a   :  { %v394_v59 = vmul.f32 %v1528_v56, %v389_v57  ;;  %2408 = vmatpush3.bf16.msra.mxu0 %v2407_v55  ;;  %v816_v55 = vld [vmem:[#allocation2 + $0x340] sm:$0xff] }
 0x66b   :  { %2409 = vmatprep.subr.bf16.mxu0 %v2648_v0 }
 0x66c   :  { %v399_v62 = vadd.f32 %v1529_v58, %v394_v59 }
 0x66e   :  { %vm400_vm5 = vcmp.ge.f32.partialorder %v399_v62, 0.0  ;;  %v401_v63 = vmul.f32 0.01, %v399_v62 }
 0x670   :  { %v402_v5 = vsel %vm400_vm5, %v399_v62, %v401_v63  ;;  %v702_v62 = vld [vmem:[#allocation2 + $0x2a0] sm:$0xff]  ;;  %v703_v63 = vld [vmem:[#allocation2 + $0x2a8] sm:$0xff] }
 0x671   :  { %1907 = vmatmul.mubr.f32.vlgmr.msra.gmra.mrb[2].mxu1 %v402_v5  ;;  %v2413_v5 = vpack.c.bf16 %v705_v4, %v704_v3  ;;  %v823_v3 = vld [vmem:[#allocation2 + $0x378] sm:$0xff] }
 0x672   :  { %2381 = vmatpush3.bf16.msra.mxu1 %v2380_v2  ;;  %1976 = vmatprep.mubr.msk.f32.mxu1 %vm2649_vm0, %v2650_v1  ;;  %v2410_v2 = vpack.c.bf16 %v703_v63, %v702_v62  ;;  %v821_v62 = vld [vmem:[#allocation2 + $0x368] sm:$0xff] }
 0x673   :  { %2382 = vmatprep.subr.bf16.mxu1 %v2648_v0 }
 0x674   :  { %2411 = vmatpush3.bf16.msra.mxu0 %v2410_v2  ;;  %v822_v2 = vld [vmem:[#allocation2 + $0x370] sm:$0xff] }
 0x675   :  { %2412 = vmatprep.subr.bf16.mxu0 %v2648_v0  ;;  %v2449_v4 = vpack.c.bf16 %v823_v3, %v822_v2  ;;  %v923_v2 = vld [vmem:[#allocation2 + $0x3a8] sm:$0xff] }
 0x676   :  { %2384 = vmatpush3.bf16.msra.mxu1 %v2383_v6  ;;  %v706_v6 = vld [vmem:[#allocation2 + $0x2c0] sm:$0xff] }
 0x677   :  { %2385 = vmatprep.subr.bf16.mxu1 %v2648_v0  ;;  %v2416_v8 = vpack.c.bf16 %v707_v7, %v706_v6 }
 0x678   :  { %2414 = vmatpush3.bf16.msra.mxu0 %v2413_v5 }
 0x679   :  { %2415 = vmatprep.subr.bf16.mxu0 %v2648_v0 }
 0x67a   :  { %2387 = vmatpush3.bf16.msra.mxu1 %v2386_v9  ;;  %v708_v9 = vld [vmem:[#allocation2 + $0x2d0] sm:$0xff] }
 0x67b   :  { %2388 = vmatprep.subr.bf16.mxu1 %v2648_v0  ;;  %v2419_v11 = vpack.c.bf16 %v709_v10, %v708_v9  ;;  %v785_v9 = vld [vmem:[%s3007_s3 + $0x11] sm:$0x1] }
 0x67c   :  { %2417 = vmatpush3.bf16.msra.mxu0 %v2416_v8 }
 0x67d   :  { %2418 = vmatprep.subr.bf16.mxu0 %v2648_v0 }
 0x67e   :  { %2390 = vmatpush3.bf16.msra.mxu1 %v2389_v12  ;;  %v710_v12 = vld [vmem:[#allocation2 + $0x2e0] sm:$0xff] }
 0x67f   :  { %2391 = vmatprep.subr.bf16.mxu1 %v2648_v0  ;;  %v2422_v14 = vpack.c.bf16 %v711_v13, %v710_v12  ;;  %v1024_v13 = vld [vmem:[#allocation2 + $0x680] sm:$0xff] }
 0x680   :  { %2420 = vmatpush3.bf16.msra.mxu0 %v2419_v11  ;;  %v786_v11 = vld [vmem:[%s3007_s3 + $0x1d] sm:$0x1] }
 0x681   :  { %2421 = vmatprep.subr.bf16.mxu0 %v2648_v0 }
 0x682   :  { %2393 = vmatpush3.bf16.msra.mxu1 %v2392_v15  ;;  %v712_v15 = vld [vmem:[#allocation2 + $0x2f0] sm:$0xff] }
 0x683   :  { %2394 = vmatprep.subr.bf16.mxu1 %v2648_v0  ;;  %v2425_v17 = vpack.c.bf16 %v713_v16, %v712_v15 }
 0x684   :  { %2423 = vmatpush3.bf16.msra.mxu0 %v2422_v14  ;;  %v1025_v14 = vld [vmem:[#allocation2 + $0x688] sm:$0xff] }
 0x685   :  { %2424 = vmatprep.subr.bf16.mxu0 %v2648_v0 }
 0x686   :  { %2396 = vmatpush3.bf16.msra.mxu1 %v2395_v21 }
 0x687   :  { %2397 = vmatprep.subr.bf16.mxu1 %v2648_v0 }
 0x688   :  { %2426 = vmatpush3.bf16.msra.mxu0 %v2425_v17  ;;  %v2476_v17 = vpack.c.bf16 %v1025_v14, %v1024_v13  ;;  %v930_v13 = vld [vmem:[#allocation2 + $0x3e0] sm:$0xff]  ;;  %v931_v14 = vld [vmem:[#allocation2 + $0x3e8] sm:$0xff] }
 0x689   :  { %2451 = vmatprep.subr.bf16.mxu0 %v2648_v0 }
 0x68a   :  { %2399 = vmatpush3.bf16.msra.mxu1 %v2398_v27 }
 0x68b   :  { %2400 = vmatprep.subr.bf16.mxu1 %v2648_v0 }
 0x68e   :  { %2402 = vmatpush3.bf16.msra.mxu1 %v2401_v34 }
 0x68f   :  { %2427 = vmatprep.subr.bf16.mxu1 %v2648_v0 }
 0x6ac   :  { %v598_v41 = vpop.f32.mrb[4].mxu0 }
 0x6ad   :  { %v1943_v42 = vpop.f32.mrb[5].mxu0 }
 0x744   :  { %v491_v37 = vpop.f32.mrb[2].mxu1 }
 0x745   :  { %v492_v38 = vadd.f32 %v1530_v36, %v491_v37  ;;  %v1908_v39 = vpop.f32.mrb[3].mxu1  ;;  %v808_v36 = vld [vmem:[#allocation2 + $0x300] sm:$0xff]  ;;  %v809_v37 = vld [vmem:[#allocation2 + $0x308] sm:$0xff] }
 0x746   :  { %v2428_v39 = vpack.c.bf16 %v809_v37, %v808_v36  ;;  %v1037_v36 = vld [vmem:[#allocation2 + $0x6e8] sm:$0xff] }
 0x747   :  { %2607 = vtanh.f32 %v492_v38  ;;  %v810_v38 = vld [vmem:[#allocation2 + $0x310] sm:$0xff] }
 0x751   :  { %v2814_v40 = vpop.eup %2607 }
 0x752   :  { %496 = vst [vmem:[%s3008_s4] sm:$0x3] %v2814_v40  ;;  %1977 = vmatmul.mubr.f32.vlgmr.msra.gmra.mrb[4].mxu1 %v2814_v40 }
 0x753   :  { %2046 = vmatprep.mubr.msk.f32.mxu1 %vm2649_vm0, %v2650_v1  ;;  %2429 = vmatpush3.bf16.msra.mxu1 %v2428_v39  ;;  %v1039_v39 = vld [vmem:[#allocation2 + $0x6f8] sm:$0xff] }
 0x754   :  { %2430 = vmatprep.subr.bf16.mxu1 %v2648_v0 }
 0x825   :  { %v668_v43 = vpop.f32.mrb[4].mxu1 }
 0x826   :  { %v669_v45 = vadd.f32 %v668_v43, %v598_v41  ;;  %v1978_v46 = vpop.f32.mrb[5].mxu1  ;;  %v811_v41 = vld [vmem:[#allocation2 + $0x318] sm:$0xff] }
 0x827   :  { %v2431_v42 = vpack.c.bf16 %v811_v41, %v810_v38  ;;  %v1038_v38 = vld [vmem:[#allocation2 + $0x6f0] sm:$0xff] }
 0x828   :  { %v673_v47 = vadd.f32 %v672_v44, %v669_v45  ;;  %v2497_v41 = vpack.c.bf16 %v1039_v39, %v1038_v38  ;;  %v1012_v38 = vld [vmem:[#allocation2 + $0x428] sm:$0xff] }
 0x829   :  { %2432 = vmatpush3.bf16.msra.mxu1 %v2431_v42  ;;  %v1041_v42 = vrot.slane %v2814_v40, 1 }
 0x82a   :  { %v676_v48 = vsel %vm127_vm1, %v673_v47, 0.0  ;;  %2433 = vmatprep.subr.bf16.mxu1 %v2648_v0 }
 0x82b   :  { %v678_v49 = vsel %vm677_vm6, %v676_v48, 0.0 }
 0x82c   :  { %679 = vadd.xlane.f32.xlu0 %v678_v49  ;;  %v812_v49 = vld [vmem:[#allocation2 + $0x320] sm:$0xff] }
 0x82d   :  { %v2434_v51 = vpack.c.bf16 %v813_v50, %v812_v49  ;;  %v918_v49 = vld [vmem:[#allocation2 + $0x380] sm:$0xff]  ;;  %v919_v50 = vld [vmem:[#allocation2 + $0x388] sm:$0xff] }
 0x82e   :  { %v2452_v52 = vpack.c.bf16 %v919_v50, %v918_v49  ;;  %v1019_v50 = vld [vmem:[#allocation2 + $0x460] sm:$0xff] }
 0x82f   :  { %2435 = vmatpush3.bf16.msra.mxu1 %v2434_v51  ;;  %v920_v51 = vld [vmem:[#allocation2 + $0x390] sm:$0xff] }
 0x830   :  { %2436 = vmatprep.subr.bf16.mxu1 %v2648_v0 }
 0x833   :  { %2438 = vmatpush3.bf16.msra.mxu1 %v2437_v54  ;;  %v2455_v54 = vpack.c.bf16 %v921_v53, %v920_v51  ;;  %v1020_v51 = vld [vmem:[#allocation2 + $0x468] sm:$0xff]  ;;  %v1021_v53 = vld [vmem:[#allocation2 + $0x470] sm:$0xff] }
 0x834   :  { %2439 = vmatprep.subr.bf16.mxu1 %v2648_v0 }
 0x8b9   :  { %v680_v56 = vpop.xlane.xlu0 %679 }
 0x8ba   :  { %v681_v57 = vmul.f32 0.03125, %v680_v56  ;;  %v817_v56 = vld [vmem:[#allocation2 + $0x348] sm:$0xff] }
 0x8bc   :  { %v682_v58 = vsub.f32 %v673_v47, %v681_v57  ;;  %v2440_v57 = vpack.c.bf16 %v817_v56, %v816_v55 }
 0x8be   :  { %v683_v59 = vsel %vm127_vm1, %v682_v58, 0.0  ;;  %v818_v58 = vld [vmem:[#allocation2 + $0x350] sm:$0xff]  ;;  %2441 = vmatpush3.bf16.msra.mxu1 %v2440_v57 }
 0x8bf   :  { %v684_v60 = vmul.f32 %v683_v59, %v683_v59  ;;  %2442 = vmatprep.subr.bf16.mxu1 %v2648_v0 }
 0x8c1   :  { %v685_v61 = vsel %vm677_vm6, %v684_v60, 0.0 }
 0x8c2   :  { %686 = vadd.xlane.f32.xlu1 %v685_v61  ;;  %v820_v61 = vld [vmem:[#allocation2 + $0x360] sm:$0xff] }
 0x8c3   :  { %v2446_v63 = vpack.c.bf16 %v821_v62, %v820_v61 }
 0x94f   :  { %v687_v18 = vpop.xlane.xlu1 %686 }
 0x950   :  { %v688_v19 = vmul.f32 0.03125, %v687_v18  ;;  %v1026_v18 = vld [vmem:[#allocation2 + $0x690] sm:$0xff] }
 0x952   :  { %v689_v20 = vadd.f32 1e-05, %v688_v19  ;;  %v1027_v19 = vld [vmem:[#allocation2 + $0x698] sm:$0xff] }
 0x954   :  { %2609 = vrsqrt.f32 %v689_v20 }
 0x95e   :  { %v2610_v21 = vpop.eup %2609 }
 0x95f   :  { %v691_v23 = vmul.f32 %v2610_v21, %v683_v59  ;;  %v819_v59 = vld [vmem:[#allocation2 + $0x358] sm:$0xff]  ;;  %v2479_v21 = vpack.c.bf16 %v1027_v19, %v1026_v18 }
 0x960   :  { %v2443_v60 = vpack.c.bf16 %v819_v59, %v818_v58 }
 0x961   :  { %v692_v25 = vmul.f32 %v691_v23, %v674_v22  ;;  %v1028_v22 = vld [vmem:[#allocation2 + $0x6a0] sm:$0xff]  ;;  %v1029_v23 = vld [vmem:[#allocation2 + $0x6a8] sm:$0xff] }
 0x962   :  { %2444 = vmatpush3.bf16.msra.mxu1 %v2443_v60 }
 0x963   :  { %v693_v26 = vadd.f32 %v692_v25, %v675_v24  ;;  %2445 = vmatprep.subr.bf16.mxu1 %v2648_v0  ;;  %v2482_v24 = vpack.c.bf16 %v1029_v23, %v1028_v22  ;;  %v1030_v25 = vld [vmem:[#allocation2 + $0x6b0] sm:$0xff] }
 0x964   :  { %v895_v23 = vld [vmem:[%s3007_s3 + $0x12] sm:$0x1] }
 0x965   :  { %vm694_vm7 = vcmp.ge.f32.partialorder %v693_v26, 0.0  ;;  %v695_v27 = vmul.f32 0.01, %v693_v26 }
 0x966   :  { %2447 = vmatpush3.bf16.msra.mxu1 %v2446_v63  ;;  %v922_v63 = vld [vmem:[#allocation2 + $0x3a0] sm:$0xff] }
 0x967   :  { %v696_v29 = vsel %vm694_vm7, %v693_v26, %v695_v27  ;;  %2448 = vmatprep.subr.bf16.mxu1 %v2648_v0  ;;  %v1031_v26 = vld [vmem:[#allocation2 + $0x6b8] sm:$0xff]  ;;  %v2458_v3 = vpack.c.bf16 %v923_v2, %v922_v63 }
 0x968   :  { %2012 = vmatmul.mubr.f32.vlgmr.msra.gmra.mrb[6].mxu0 %v696_v29  ;;  %v2485_v27 = vpack.c.bf16 %v1031_v26, %v1030_v25  ;;  %v1032_v29 = vld [vmem:[#allocation2 + $0x6c0] sm:$0xff]  ;;  %v896_v25 = vld [vmem:[%s3007_s3 + $0x1e] sm:$0x1] }
 0x969   :  { %2081 = vmatprep.mubr.msk.f32.mxu0 %vm2649_vm0, %v2650_v1  ;;  %2453 = vmatpush3.bf16.msra.mxu0 %v2452_v52  ;;  %v2518_v52 = vpack.c.bf16 %v1020_v51, %v1019_v50 }
 0x96a   :  { %2450 = vmatpush3.bf16.msra.mxu1 %v2449_v4  ;;  %2454 = vmatprep.subr.bf16.mxu0 %v2648_v0  ;;  %v924_v4 = vld [vmem:[#allocation2 + $0x3b0] sm:$0xff] }
 0x96b   :  { %2475 = vmatprep.subr.bf16.mxu1 %v2648_v0 }
 0x96d   :  { %2456 = vmatpush3.bf16.msra.mxu0 %v2455_v54  ;;  %v1022_v54 = vld [vmem:[#allocation2 + $0x478] sm:$0xff] }
 0x96e   :  { %2457 = vmatprep.subr.bf16.mxu0 %v2648_v0 }
 0x971   :  { %2459 = vmatpush3.bf16.msra.mxu0 %v2458_v3 }
 0x972   :  { %2460 = vmatprep.subr.bf16.mxu0 %v2648_v0 }
 0xa3b   :  { %v781_v31 = vpop.f32.mrb[6].mxu0 }
 0xa3c   :  { %v782_v32 = vadd.f32 %v781_v31, %v714_v30  ;;  %v2013_v33 = vpop.f32.mrb[7].mxu0  ;;  %v1033_v30 = vld [vmem:[#allocation2 + $0x6c8] sm:$0xff] }
 0xa3d   :  { %v2488_v31 = vpack.c.bf16 %v1033_v30, %v1032_v29  ;;  %v1035_v33 = vld [vmem:[#allocation2 + $0x6d8] sm:$0xff]  ;;  %v1008_v29 = vld [vmem:[#allocation2 + $0x408] sm:$0xff] }
 0xa3e   :  { %v787_v34 = vsel %vm127_vm1, %v782_v32, 0.0 }
 0xa3f   :  { %v788_v35 = vsel %vm677_vm6, %v787_v34, 0.0 }
 0xa40   :  { %789 = vadd.xlane.f32.xlu0 %v788_v35  ;;  %v1036_v35 = vld [vmem:[#allocation2 + $0x6e0] sm:$0xff] }
 0xa41   :  { %v2494_v37 = vpack.c.bf16 %v1037_v36, %v1036_v35 }
 0xacd   :  { %v790_v43 = vpop.xlane.xlu0 %789 }
 0xace   :  { %v791_v44 = vmul.f32 0.03125, %v790_v43  ;;  %v824_v43 = vld [vmem:[%s3007_s3 + $0x6] sm:$0x1] }
 0xad0   :  { %v792_v45 = vsub.f32 %v782_v32, %v791_v44  ;;  %v1034_v32 = vld [vmem:[#allocation2 + $0x6d0] sm:$0xff] }
 0xad1   :  { %v2491_v34 = vpack.c.bf16 %v1035_v33, %v1034_v32  ;;  %v1009_v33 = vld [vmem:[#allocation2 + $0x410] sm:$0xff] }
 0xad2   :  { %v793_v46 = vsel %vm127_vm1, %v792_v45, 0.0 }
 0xad3   :  { %v794_v47 = vmul.f32 %v793_v46, %v793_v46 }
 0xad5   :  { %v795_v48 = vsel %vm677_vm6, %v794_v47, 0.0 }
 0xad6   :  { %796 = vadd.xlane.f32.xlu1 %v795_v48 }
 0xb63   :  { %v797_v5 = vpop.xlane.xlu1 %796 }
 0xb64   :  { %v798_v6 = vmul.f32 0.03125, %v797_v5  ;;  %v925_v5 = vld [vmem:[#allocation2 + $0x3b8] sm:$0xff] }
 0xb66   :  { %v799_v7 = vadd.f32 1e-05, %v798_v6  ;;  %v2461_v6 = vpack.c.bf16 %v925_v5, %v924_v4  ;;  %v1208_v5 = vld [vmem:[#allocation2 + $0x480] sm:$0xff] }
 0xb68   :  { %2611 = vrsqrt.f32 %v799_v7  ;;  %v926_v7 = vld [vmem:[#allocation2 + $0x3c0] sm:$0xff]  ;;  %2462 = vmatpush3.bf16.msra.mxu0 %v2461_v6  ;;  %v1209_v6 = vld [vmem:[#allocation2 + $0x488] sm:$0xff] }
 0xb69   :  { %2463 = vmatprep.subr.bf16.mxu0 %v2648_v0 }
 0xb72   :  { %v2612_v8 = vpop.eup %2611 }
 0xb73   :  { %v801_v10 = vmul.f32 %v2612_v8, %v793_v46  ;;  %v927_v8 = vld [vmem:[#allocation2 + $0x3c8] sm:$0xff] }
 0xb75   :  { %v802_v12 = vmul.f32 %v801_v10, %v785_v9  ;;  %v2464_v9 = vpack.c.bf16 %v927_v8, %v926_v7  ;;  %v928_v10 = vld [vmem:[#allocation2 + $0x3d0] sm:$0xff]  ;;  %v2524_v8 = vpack.c.bf16 %v1209_v6, %v1208_v5  ;;  %v1325_v6 = vld [vmem:[#allocation2 + $0x538] sm:$0xff] }
 0xb76   :  { %v1210_v7 = vld [vmem:[#allocation2 + $0x490] sm:$0xff] }
 0xb77   :  { %v803_v15 = vadd.f32 %v802_v12, %v786_v11  ;;  %v929_v11 = vld [vmem:[#allocation2 + $0x3d8] sm:$0xff]  ;;  %2465 = vmatpush3.bf16.msra.mxu0 %v2464_v9  ;;  %v1324_v5 = vld [vmem:[#allocation2 + $0x530] sm:$0xff] }
 0xb78   :  { %v2467_v12 = vpack.c.bf16 %v929_v11, %v928_v10  ;;  %2466 = vmatprep.subr.bf16.mxu0 %v2648_v0  ;;  %v1211_v9 = vld [vmem:[#allocation2 + $0x498] sm:$0xff] }
 0xb79   :  { %vm804_vm8 = vcmp.ge.f32.partialorder %v803_v15, 0.0  ;;  %v805_v16 = vmul.f32 0.01, %v803_v15  ;;  %v2527_v10 = vpack.c.bf16 %v1211_v9, %v1210_v7  ;;  %v2557_v7 = vpack.c.bf16 %v1325_v6, %v1324_v5  ;;  %v1327_v9 = vld [vmem:[#allocation2 + $0x548] sm:$0xff] }
 0xb7b   :  { %v806_v20 = vsel %vm804_vm8, %v803_v15, %v805_v16  ;;  %2468 = vmatpush3.bf16.msra.mxu0 %v2467_v12  ;;  %v2470_v15 = vpack.c.bf16 %v931_v14, %v930_v13  ;;  %v932_v16 = vld [vmem:[#allocation2 + $0x3f0] sm:$0xff] }
 0xb7c   :  { %2047 = vmatmul.mubr.f32.vlgmr.msra.gmra.mrb[6].mxu1 %v806_v20  ;;  %2469 = vmatprep.subr.bf16.mxu0 %v2648_v0 }
 0xb7d   :  { %2477 = vmatpush3.bf16.msra.mxu1 %v2476_v17  ;;  %2116 = vmatprep.mubr.msk.f32.mxu1 %vm2649_vm0, %v2650_v1  ;;  %v933_v17 = vld [vmem:[#allocation2 + $0x3f8] sm:$0xff] }
 0xb7e   :  { %2478 = vmatprep.subr.bf16.mxu1 %v2648_v0  ;;  %v2473_v18 = vpack.c.bf16 %v933_v17, %v932_v16  ;;  %v1212_v16 = vld [vmem:[#allocation2 + $0x4a0] sm:$0xff]  ;;  %v1213_v17 = vld [vmem:[#allocation2 + $0x4a8] sm:$0xff] }
 0xb7f   :  { %2471 = vmatpush3.bf16.msra.mxu0 %v2470_v15 }
 0xb80   :  { %2472 = vmatprep.subr.bf16.mxu0 %v2648_v0 }
 0xb81   :  { %2480 = vmatpush3.bf16.msra.mxu1 %v2479_v21 }
 0xb82   :  { %2481 = vmatprep.subr.bf16.mxu1 %v2648_v0 }
 0xb83   :  { %2474 = vmatpush3.bf16.msra.mxu0 %v2473_v18  ;;  %v2530_v18 = vpack.c.bf16 %v1213_v17, %v1212_v16  ;;  %v1332_v16 = vld [vmem:[#allocation2 + $0x570] sm:$0xff]  ;;  %v1333_v17 = vld [vmem:[#allocation2 + $0x578] sm:$0xff] }
 0xb84   :  { %2499 = vmatprep.subr.bf16.mxu0 %v2648_v0 }
 0xb85   :  { %2483 = vmatpush3.bf16.msra.mxu1 %v2482_v24 }
 0xb86   :  { %2484 = vmatprep.subr.bf16.mxu1 %v2648_v0 }
 0xb89   :  { %2486 = vmatpush3.bf16.msra.mxu1 %v2485_v27  ;;  %v1007_v27 = vld [vmem:[#allocation2 + $0x400] sm:$0xff] }
 0xb8a   :  { %2487 = vmatprep.subr.bf16.mxu1 %v2648_v0  ;;  %v2500_v32 = vpack.c.bf16 %v1008_v29, %v1007_v27  ;;  %v1220_v29 = vld [vmem:[#allocation2 + $0x4e0] sm:$0xff] }
 0xb8d   :  { %2489 = vmatpush3.bf16.msra.mxu1 %v2488_v31 }
 0xb8e   :  { %2490 = vmatprep.subr.bf16.mxu1 %v2648_v0 }
 0xb91   :  { %2492 = vmatpush3.bf16.msra.mxu1 %v2491_v34  ;;  %v1010_v34 = vld [vmem:[#allocation2 + $0x418] sm:$0xff] }
 0xb92   :  { %2493 = vmatprep.subr.bf16.mxu1 %v2648_v0  ;;  %v2503_v36 = vpack.c.bf16 %v1010_v34, %v1009_v33  ;;  %v1223_v33 = vld [vmem:[#allocation2 + $0x4f8] sm:$0xff] }
 0xb95   :  { %2495 = vmatpush3.bf16.msra.mxu1 %v2494_v37  ;;  %v1011_v37 = vld [vmem:[#allocation2 + $0x420] sm:$0xff] }
 0xb96   :  { %2496 = vmatprep.subr.bf16.mxu1 %v2648_v0  ;;  %v2506_v39 = vpack.c.bf16 %v1012_v38, %v1011_v37 }
 0xb99   :  { %2498 = vmatpush3.bf16.msra.mxu1 %v2497_v41  ;;  %v1013_v41 = vld [vmem:[#allocation2 + $0x430] sm:$0xff] }
 0xb9a   :  { %2523 = vmatprep.subr.bf16.mxu1 %v2648_v0 }
 0xb9c   :  { %2117 = vmatmul.mubr.f32.vlgmr.msra.gmra.mrb[8].mxu1 %v1041_v42  ;;  %v1014_v42 = vld [vmem:[#allocation2 + $0x438] sm:$0xff] }
 0xb9d   :  { %2186 = vmatprep.mubr.msk.f32.mxu1 %vm2649_vm0, %v2650_v1  ;;  %2525 = vmatpush3.bf16.msra.mxu1 %v2524_v8  ;;  %v1326_v8 = vld [vmem:[#allocation2 + $0x540] sm:$0xff] }
 0xb9e   :  { %2526 = vmatprep.subr.bf16.mxu1 %v2648_v0 }
 0xba1   :  { %2528 = vmatpush3.bf16.msra.mxu1 %v2527_v10  ;;  %v2560_v10 = vpack.c.bf16 %v1327_v9, %v1326_v8  ;;  %v1405_v8 = vld [vmem:[%s3007_s3 + $0x16] sm:$0x1] }
 0xba2   :  { %2529 = vmatprep.subr.bf16.mxu1 %v2648_v0 }
 0xba5   :  { %2531 = vmatpush3.bf16.msra.mxu1 %v2530_v18  ;;  %v2569_v18 = vpack.c.bf16 %v1333_v17, %v1332_v16 }
 0xba6   :  { %2532 = vmatprep.subr.bf16.mxu1 %v2648_v0 }
 0xc4f   :  { %v891_v44 = vpop.f32.mrb[6].mxu1 }
 0xc50   :  { %v892_v45 = vadd.f32 %v891_v44, %v824_v43  ;;  %v2048_v46 = vpop.f32.mrb[7].mxu1  ;;  %v2509_v43 = vpack.c.bf16 %v1014_v42, %v1013_v41  ;;  %v1015_v44 = vld [vmem:[#allocation2 + $0x440] sm:$0xff] }
 0xc51   :  { %v1186_v42 = vld [vmem:[%s3007_s3 + $0x20] sm:$0x1] }
 0xc52   :  { %v897_v47 = vsel %vm127_vm1, %v892_v45, 0.0 }
 0xc53   :  { %v898_v48 = vsel %vm677_vm6, %v897_v47, 0.0  ;;  %v1017_v47 = vld [vmem:[#allocation2 + $0x450] sm:$0xff] }
 0xc54   :  { %899 = vadd.xlane.f32.xlu0 %v898_v48  ;;  %v1018_v48 = vld [vmem:[#allocation2 + $0x458] sm:$0xff] }
 0xc55   :  { %v2515_v49 = vpack.c.bf16 %v1018_v48, %v1017_v47  ;;  %v1224_v47 = vld [vmem:[%s3007_s3 + $0x9] sm:$0x1] }
 0xc6f   :  { %v2891_v55 = vpop.f32.mrb[8].mxu1 }
 0xc70   :  { %v2118_v56 = vpop.f32.mrb[9].mxu1 }
 0xc71   :  { %v2521_v56 = vpack.c.bf16 %v1022_v54, %v1021_v53  ;;  %v1318_v53 = vld [vmem:[#allocation2 + $0x500] sm:$0xff]  ;;  %v1319_v54 = vld [vmem:[#allocation2 + $0x508] sm:$0xff] }
 0xce1   :  { %v900_v57 = vpop.xlane.xlu0 %899 }
 0xce2   :  { %v901_v58 = vmul.f32 0.03125, %v900_v57  ;;  %v934_v57 = vld [vmem:[%s3007_s3 + $0x7] sm:$0x1] }
 0xce4   :  { %v902_v59 = vsub.f32 %v892_v45, %v901_v58  ;;  %v1016_v45 = vld [vmem:[#allocation2 + $0x448] sm:$0xff] }
 0xce5   :  { %v2512_v46 = vpack.c.bf16 %v1016_v45, %v1015_v44 }
 0xce6   :  { %v903_v60 = vsel %vm127_vm1, %v902_v59, 0.0 }
 0xce7   :  { %v904_v61 = vmul.f32 %v903_v60, %v903_v60 }
 0xce9   :  { %v905_v62 = vsel %vm677_vm6, %v904_v61, 0.0 }
 0xcea   :  { %906 = vadd.xlane.f32.xlu1 %v905_v62  ;;  %v1183_v62 = vld [vmem:[%s3007_s3 + $0x8] sm:$0x1] }
 0xd77   :  { %v907_v19 = vpop.xlane.xlu1 %906 }
 0xd78   :  { %v908_v20 = vmul.f32 0.03125, %v907_v19  ;;  %v1214_v19 = vld [vmem:[#allocation2 + $0x4b0] sm:$0xff] }
 0xd7a   :  { %v909_v21 = vadd.f32 1e-05, %v908_v20  ;;  %v1215_v20 = vld [vmem:[#allocation2 + $0x4b8] sm:$0xff] }
 0xd7c   :  { %2613 = vrsqrt.f32 %v909_v21  ;;  %v2533_v21 = vpack.c.bf16 %v1215_v20, %v1214_v19 }
 0xd7e   :  { %2534 = vmatpush3.bf16.msra.mxu1 %v2533_v21 }
 0xd7f   :  { %2535 = vmatprep.subr.bf16.mxu1 %v2648_v0 }
 0xd86   :  { %v2614_v22 = vpop.eup %2613 }
 0xd87   :  { %v911_v24 = vmul.f32 %v2614_v22, %v903_v60  ;;  %v1216_v22 = vld [vmem:[#allocation2 + $0x4c0] sm:$0xff] }
 0xd89   :  { %v912_v26 = vmul.f32 %v911_v24, %v895_v23  ;;  %v1217_v23 = vld [vmem:[#allocation2 + $0x4c8] sm:$0xff] }
 0xd8a   :  { %v2536_v24 = vpack.c.bf16 %v1217_v23, %v1216_v22  ;;  %v1295_v23 = vld [vmem:[%s3007_s3 + $0x15] sm:$0x1] }
 0xd8b   :  { %v913_v30 = vadd.f32 %v912_v26, %v896_v25  ;;  %v1218_v25 = vld [vmem:[#allocation2 + $0x4d0] sm:$0xff]  ;;  %v1219_v26 = vld [vmem:[#allocation2 + $0x4d8] sm:$0xff] }
 0xd8c   :  { %2537 = vmatpush3.bf16.msra.mxu1 %v2536_v24  ;;  %v2539_v27 = vpack.c.bf16 %v1219_v26, %v1218_v25  ;;  %v1296_v25 = vld [vmem:[%s3007_s3 + $0x21] sm:$0x1] }
 0xd8d   :  { %vm914_vm9 = vcmp.ge.f32.partialorder %v913_v30, 0.0  ;;  %v915_v31 = vmul.f32 0.01, %v913_v30  ;;  %2538 = vmatprep.subr.bf16.mxu1 %v2648_v0 }
 0xd8f   :  { %v916_v35 = vsel %vm914_vm9, %v913_v30, %v915_v31  ;;  %v1221_v30 = vld [vmem:[#allocation2 + $0x4e8] sm:$0xff] }
 0xd90   :  { %2082 = vmatmul.mubr.f32.vlgmr.msra.gmra.mrb[8].mxu0 %v916_v35  ;;  %2540 = vmatpush3.bf16.msra.mxu1 %v2539_v27  ;;  %v2542_v31 = vpack.c.bf16 %v1221_v30, %v1220_v29 }
 0xd91   :  { %2501 = vmatpush3.bf16.msra.mxu0 %v2500_v32  ;;  %2151 = vmatprep.mubr.msk.f32.mxu0 %vm2649_vm0, %v2650_v1  ;;  %v1222_v32 = vld [vmem:[#allocation2 + $0x4f0] sm:$0xff] }
 0xd92   :  { %2502 = vmatprep.subr.bf16.mxu0 %v2648_v0  ;;  %2541 = vmatprep.subr.bf16.mxu1 %v2648_v0  ;;  %v2545_v34 = vpack.c.bf16 %v1223_v33, %v1222_v32 }
 0xd94   :  { %2543 = vmatpush3.bf16.msra.mxu1 %v2542_v31  ;;  %v1334_v31 = vld [vmem:[%s3007_s3 + $0xa] sm:$0x1] }
 0xd95   :  { %2504 = vmatpush3.bf16.msra.mxu0 %v2503_v36  ;;  %2544 = vmatprep.subr.bf16.mxu1 %v2648_v0 }
 0xd96   :  { %2505 = vmatprep.subr.bf16.mxu0 %v2648_v0 }
 0xd98   :  { %2546 = vmatpush3.bf16.msra.mxu1 %v2545_v34 }
 0xd99   :  { %2507 = vmatpush3.bf16.msra.mxu0 %v2506_v39  ;;  %2571 = vmatprep.subr.bf16.mxu1 %v2648_v0  ;;  %v1185_v39 = vld [vmem:[%s3007_s3 + $0x14] sm:$0x1] }
 0xd9a   :  { %2508 = vmatprep.subr.bf16.mxu0 %v2648_v0 }
 0xd9d   :  { %2510 = vmatpush3.bf16.msra.mxu0 %v2509_v43 }
 0xd9e   :  { %2511 = vmatprep.subr.bf16.mxu0 %v2648_v0 }
 0xda1   :  { %2513 = vmatpush3.bf16.msra.mxu0 %v2512_v46 }
 0xda2   :  { %2514 = vmatprep.subr.bf16.mxu0 %v2648_v0 }
 0xda5   :  { %2516 = vmatpush3.bf16.msra.mxu0 %v2515_v49 }
 0xda6   :  { %2517 = vmatprep.subr.bf16.mxu0 %v2648_v0 }
 0xda9   :  { %2519 = vmatpush3.bf16.msra.mxu0 %v2518_v52 }
 0xdaa   :  { %2520 = vmatprep.subr.bf16.mxu0 %v2648_v0 }
 0xdad   :  { %2522 = vmatpush3.bf16.msra.mxu0 %v2521_v56  ;;  %v1320_v56 = vld [vmem:[#allocation2 + $0x510] sm:$0xff] }
 0xdae   :  { %2547 = vmatprep.subr.bf16.mxu0 %v2648_v0 }
 0xdb0   :  { %2152 = vmatmul.mubr.f32.vlgmr.msra.gmra.mrb[10].mxu0 %v2814_v40 }
 0xdb1   :  { %2221 = vmatprep.mubr.msk.f32.mxu0 %vm2649_vm0, %v2650_v1 }
 0xe63   :  { %v1001_v58 = vpop.f32.mrb[8].mxu0 }
 0xe64   :  { %v1002_v59 = vadd.f32 %v1001_v58, %v934_v57  ;;  %v2083_v60 = vpop.f32.mrb[9].mxu0  ;;  %v2548_v57 = vpack.c.bf16 %v1319_v54, %v1318_v53  ;;  %v1321_v58 = vld [vmem:[#allocation2 + $0x518] sm:$0xff]  ;;  %v1434_v53 = vld [vmem:[#allocation2 + $0x5b0] sm:$0xff] }
 0xe65   :  { %v1435_v54 = vld [vmem:[#allocation2 + $0x5b8] sm:$0xff] }
 0xe66   :  { %1005 = vst [vmem:[%s3008_s4 + $0x2] sm:$0x1] %v1002_v59  ;;  %2549 = vmatpush3.bf16.msra.mxu0 %v2548_v57  ;;  %v1436_v57 = vld [vmem:[#allocation2 + $0x5c0] sm:$0xff] }
 0xe67   :  { %2550 = vmatprep.subr.bf16.mxu0 %v2648_v0 }
 0xe83   :  { %v1179_v61 = vpop.f32.mrb[10].mxu0 }
 0xe84   :  { %v1180_v40 = vadd.f32 %v1179_v61, %v2891_v55  ;;  %v2153_v63 = vpop.f32.mrb[11].mxu0 }
 0xe86   :  { %v1184_v2 = vadd.f32 %v1183_v62, %v1180_v40 }
 0xe88   :  { %v1187_v3 = vsel %vm127_vm1, %v1184_v2, 0.0 }
 0xe89   :  { %v1188_v4 = vsel %vm677_vm6, %v1187_v3, 0.0  ;;  %v1323_v3 = vld [vmem:[#allocation2 + $0x528] sm:$0xff] }
 0xe8a   :  { %1189 = vadd.xlane.f32.xlu0 %v1188_v4 }
 0xf17   :  { %v1190_v55 = vpop.xlane.xlu0 %1189 }
 0xf18   :  { %v1191_v11 = vmul.f32 0.03125, %v1190_v55  ;;  %v1328_v55 = vld [vmem:[#allocation2 + $0x550] sm:$0xff] }
 0xf1a   :  { %v1192_v12 = vsub.f32 %v1184_v2, %v1191_v11  ;;  %v1322_v2 = vld [vmem:[#allocation2 + $0x520] sm:$0xff]  ;;  %v1329_v11 = vld [vmem:[#allocation2 + $0x558] sm:$0xff] }
 0xf1b   :  { %v2554_v4 = vpack.c.bf16 %v1323_v3, %v1322_v2  ;;  %v1443_v2 = vld [vmem:[#allocation2 + $0x5f8] sm:$0xff] }
 0xf1c   :  { %v1193_v13 = vsel %vm127_vm1, %v1192_v12, 0.0  ;;  %v2563_v12 = vpack.c.bf16 %v1329_v11, %v1328_v55 }
 0xf1d   :  { %v1194_v14 = vmul.f32 %v1193_v13, %v1193_v13 }
 0xf1f   :  { %v1195_v15 = vsel %vm677_vm6, %v1194_v14, 0.0  ;;  %v1331_v14 = vld [vmem:[#allocation2 + $0x568] sm:$0xff] }
 0xf20   :  { %1196 = vadd.xlane.f32.xlu1 %v1195_v15 }
 0xfad   :  { %v1197_v35 = vpop.xlane.xlu1 %1196 }
 0xfae   :  { %v1198_v36 = vmul.f32 0.03125, %v1197_v35 }
 0xfb0   :  { %v1199_v37 = vadd.f32 1e-05, %v1198_v36 }
 0xfb2   :  { %2615 = vrsqrt.f32 %v1199_v37  ;;  %v1428_v37 = vld [vmem:[#allocation2 + $0x580] sm:$0xff] }
 0xfbc   :  { %v2616_v38 = vpop.eup %2615 }
 0xfbd   :  { %v1201_v41 = vmul.f32 %v2616_v38, %v1193_v13  ;;  %v1330_v13 = vld [vmem:[#allocation2 + $0x560] sm:$0xff]  ;;  %v1429_v38 = vld [vmem:[#allocation2 + $0x588] sm:$0xff] }
 0xfbe   :  { %v2566_v15 = vpack.c.bf16 %v1331_v14, %v1330_v13  ;;  %v1444_v13 = vld [vmem:[%s3007_s3 + $0xb] sm:$0x1] }
 0xfbf   :  { %v1202_v43 = vmul.f32 %v1201_v41, %v1185_v39  ;;  %v1430_v39 = vld [vmem:[#allocation2 + $0x590] sm:$0xff]  ;;  %v2572_v41 = vpack.c.bf16 %v1429_v38, %v1428_v37 }
 0xfc1   :  { %v1203_v44 = vadd.f32 %v1202_v43, %v1186_v42  ;;  %v1431_v42 = vld [vmem:[#allocation2 + $0x598] sm:$0xff] }
 0xfc2   :  { %v2575_v43 = vpack.c.bf16 %v1431_v42, %v1430_v39 }
 0xfc3   :  { %vm1204_vm10 = vcmp.ge.f32.partialorder %v1203_v44, 0.0  ;;  %v1205_v45 = vmul.f32 0.01, %v1203_v44 }
 0xfc5   :  { %v1206_v46 = vsel %vm1204_vm10, %v1203_v44, %v1205_v45 }
 0xfc6   :  { %2187 = vmatmul.mubr.f32.vlgmr.msra.gmra.mrb[10].mxu1 %v1206_v46 }
 0xfc7   :  { %2256 = vmatprep.mubr.msk.f32.mxu1 %vm2649_vm0, %v2650_v1  ;;  %v2551_v1 = vpack.c.bf16 %v1321_v58, %v1320_v56  ;;  %2573 = vmatpush3.bf16.msra.mxu1 %v2572_v41  ;;  %v2581_v56 = vpack.c.bf16 %v1435_v54, %v1434_v53  ;;  %v1437_v58 = vld [vmem:[#allocation2 + $0x5c8] sm:$0xff] }
 0xfc8   :  { %2574 = vmatprep.subr.bf16.mxu1 %v2648_v0  ;;  %v2584_v28 = vpack.c.bf16 %v1437_v58, %v1436_v57 }
 0xfc9   :  { %2552 = vmatpush3.bf16.msra.mxu0 %v2551_v1  ;;  %v1438_v1 = vld [vmem:[#allocation2 + $0x5d0] sm:$0xff] }
 0xfca   :  { %2553 = vmatprep.subr.bf16.mxu0 %v2648_v0 }
 0xfcb   :  { %2576 = vmatpush3.bf16.msra.mxu1 %v2575_v43 }
 0xfcc   :  { %2577 = vmatprep.subr.bf16.mxu1 %v2648_v0 }
 0xfcd   :  { %2555 = vmatpush3.bf16.msra.mxu0 %v2554_v4 }
 0xfce   :  { %2556 = vmatprep.subr.bf16.mxu0 %v2648_v0 }
 0xfd1   :  { %2558 = vmatpush3.bf16.msra.mxu0 %v2557_v7 }
 0xfd2   :  { %2559 = vmatprep.subr.bf16.mxu0 %v2648_v0 }
 0xfd5   :  { %2561 = vmatpush3.bf16.msra.mxu0 %v2560_v10  ;;  %v1406_v10 = vld [vmem:[%s3007_s3 + $0x22] sm:$0x1] }
 0xfd6   :  { %2562 = vmatprep.subr.bf16.mxu0 %v2648_v0 }
 0xfd9   :  { %2564 = vmatpush3.bf16.msra.mxu0 %v2563_v12 }
 0xfda   :  { %2565 = vmatprep.subr.bf16.mxu0 %v2648_v0 }
 0xfdd   :  { %2567 = vmatpush3.bf16.msra.mxu0 %v2566_v15 }
 0xfde   :  { %2568 = vmatprep.subr.bf16.mxu0 %v2648_v0 }
 0xfe1   :  { %2570 = vmatpush3.bf16.msra.mxu0 %v2569_v18 }
0x1099   :  { %v1291_v48 = vpop.f32.mrb[10].mxu1 }
0x109a   :  { %v1292_v49 = vadd.f32 %v1291_v48, %v1224_v47  ;;  %v2188_v50 = vpop.f32.mrb[11].mxu1 }
0x109b   :  { %v1432_v50 = vld [vmem:[#allocation2 + $0x5a0] sm:$0xff] }
0x109c   :  { %v1297_v51 = vsel %vm127_vm1, %v1292_v49, 0.0 }
0x109d   :  { %v1298_v52 = vsel %vm677_vm6, %v1297_v51, 0.0  ;;  %v1433_v51 = vld [vmem:[#allocation2 + $0x5a8] sm:$0xff] }
0x109e   :  { %1299 = vadd.xlane.f32.xlu0 %v1298_v52  ;;  %v2578_v52 = vpack.c.bf16 %v1433_v51, %v1432_v50 }
0x10a0   :  { %2579 = vmatpush3.bf16.msra.mxu1 %v2578_v52 }
0x10a1   :  { %2580 = vmatprep.subr.bf16.mxu1 %v2648_v0 }
0x10a4   :  { %2582 = vmatpush3.bf16.msra.mxu1 %v2581_v56 }
0x10a5   :  { %2583 = vmatprep.subr.bf16.mxu1 %v2648_v0 }
0x10a8   :  { %2585 = vmatpush3.bf16.msra.mxu1 %v2584_v28 }
0x10a9   :  { %2586 = vmatprep.subr.bf16.mxu1 %v2648_v0 }
0x112b   :  { %v1300_v59 = vpop.xlane.xlu0 %1299 }
0x112c   :  { %v1301_v60 = vmul.f32 0.03125, %v1300_v59  ;;  %v1439_v59 = vld [vmem:[#allocation2 + $0x5d8] sm:$0xff] }
0x112e   :  { %v1302_v61 = vsub.f32 %v1292_v49, %v1301_v60  ;;  %v2587_v60 = vpack.c.bf16 %v1439_v59, %v1438_v1 }
0x1130   :  { %v1303_v62 = vsel %vm127_vm1, %v1302_v61, 0.0  ;;  %2588 = vmatpush3.bf16.msra.mxu1 %v2587_v60  ;;  %v1440_v61 = vld [vmem:[#allocation2 + $0x5e0] sm:$0xff] }
0x1131   :  { %v1304_v40 = vmul.f32 %v1303_v62, %v1303_v62  ;;  %2589 = vmatprep.subr.bf16.mxu1 %v2648_v0 }
0x1133   :  { %v1305_v63 = vsel %vm677_vm6, %v1304_v40, 0.0 }
0x1134   :  { %1306 = vadd.xlane.f32.xlu1 %v1305_v63  ;;  %v1442_v63 = vld [vmem:[#allocation2 + $0x5f0] sm:$0xff] }
0x1135   :  { %v2593_v3 = vpack.c.bf16 %v1443_v2, %v1442_v63 }
0x11c1   :  { %v1307_v19 = vpop.xlane.xlu1 %1306 }
0x11c2   :  { %v1308_v20 = vmul.f32 0.03125, %v1307_v19 }
0x11c4   :  { %v1309_v21 = vadd.f32 1e-05, %v1308_v20 }
0x11c6   :  { %2617 = vrsqrt.f32 %v1309_v21 }
0x11d0   :  { %v2618_v22 = vpop.eup %2617 }
0x11d1   :  { %v1311_v24 = vmul.f32 %v2618_v22, %v1303_v62  ;;  %v1441_v62 = vld [vmem:[#allocation2 + $0x5e8] sm:$0xff] }
0x11d2   :  { %v2590_v40 = vpack.c.bf16 %v1441_v62, %v1440_v61 }
0x11d3   :  { %v1312_v26 = vmul.f32 %v1311_v24, %v1295_v23 }
0x11d4   :  { %2591 = vmatpush3.bf16.msra.mxu1 %v2590_v40 }
0x11d5   :  { %v1313_v27 = vadd.f32 %v1312_v26, %v1296_v25  ;;  %2592 = vmatprep.subr.bf16.mxu1 %v2648_v0 }
0x11d7   :  { %vm1314_vm11 = vcmp.ge.f32.partialorder %v1313_v27, 0.0  ;;  %v1315_v29 = vmul.f32 0.01, %v1313_v27 }
0x11d8   :  { %2594 = vmatpush3.bf16.msra.mxu1 %v2593_v3 }
0x11d9   :  { %v1316_v30 = vsel %vm1314_vm11, %v1313_v27, %v1315_v29 }
0x11da   :  { %2222 = vmatmul.mubr.f32.vlgmr.msra.gmra.mrb[12].mxu0 %v1316_v30 }
0x12ad   :  { %v1401_v32 = vpop.f32.mrb[12].mxu0 }
0x12ae   :  { %v1402_v33 = vadd.f32 %v1401_v32, %v1334_v31  ;;  %v2223_v34 = vpop.f32.mrb[13].mxu0 }
0x12b0   :  { %v1407_v35 = vsel %vm127_vm1, %v1402_v33, 0.0 }
0x12b1   :  { %v1408_v36 = vsel %vm677_vm6, %v1407_v35, 0.0 }
0x12b2   :  { %1409 = vadd.xlane.f32.xlu0 %v1408_v36 }
0x133f   :  { %v1410_v44 = vpop.xlane.xlu0 %1409 }
0x1340   :  { %v1411_v45 = vmul.f32 0.03125, %v1410_v44 }
0x1342   :  { %v1412_v46 = vsub.f32 %v1402_v33, %v1411_v45 }
0x1344   :  { %v1413_v47 = vsel %vm127_vm1, %v1412_v46, 0.0 }
0x1345   :  { %v1414_v48 = vmul.f32 %v1413_v47, %v1413_v47 }
0x1347   :  { %v1415_v49 = vsel %vm677_vm6, %v1414_v48, 0.0 }
0x1348   :  { %1416 = vadd.xlane.f32.xlu1 %v1415_v49 }
0x13d5   :  { %v1417_v4 = vpop.xlane.xlu1 %1416 }
0x13d6   :  { %v1418_v5 = vmul.f32 0.03125, %v1417_v4 }
0x13d8   :  { %v1419_v6 = vadd.f32 1e-05, %v1418_v5 }
0x13da   :  { %2619 = vrsqrt.f32 %v1419_v6 }
0x13e4   :  { %v2620_v7 = vpop.eup %2619 }
0x13e5   :  { %v1421_v9 = vmul.f32 %v2620_v7, %v1413_v47 }
0x13e7   :  { %v1422_v55 = vmul.f32 %v1421_v9, %v1405_v8 }
0x13e9   :  { %v1423_v11 = vadd.f32 %v1422_v55, %v1406_v10 }
0x13eb   :  { %vm1424_vm12 = vcmp.ge.f32.partialorder %v1423_v11, 0.0  ;;  %v1425_v12 = vmul.f32 0.01, %v1423_v11 }
0x13ed   :  { %v1426_v0 = vsel %vm1424_vm12, %v1423_v11, %v1425_v12 }
0x13ee   :  { %2257 = vmatmul.mubr.f32.vlgmr.msra.gmra.mrb[12].mxu1 %v1426_v0 }
0x14c1   :  { %v1511_v14 = vpop.f32.mrb[12].mxu1 }
0x14c2   :  { %v1512_v15 = vadd.f32 %v1511_v14, %v1444_v13  ;;  %v2258_v16 = vpop.f32.mrb[13].mxu1 }
0x14c4   :  { %1515 = vst [vmem:[%s3008_s4 + $0x3] sm:$0x1] %v1512_v15 }
0x14c5   :  { %1520 = vsyncpa [#allocation3], 1 }

</bundles_post_ra>
